<compile_context>
chip_gen: v6e
topology: v6e:2x2x1
jax: 0.10.0
libtpu: 0.0.40
codegen_flags: <defaults>
</compile_context>

<pallas_src>
import functools

import jax
import jax.numpy as jnp
import numpy as np
from jax import lax
from jax.experimental import pallas as pl
from jax.experimental.pallas import tpu as pltpu


MAX_IMAGES_PER_STEP = 256   # 256 images -> 2048 rows/step, ~15 MB VMEM (fits 32 MiB limit)


# ----------------------------------------------------------------------------
# Packed-weight index maps (static, built once with NumPy).
#
# Layer-1 Toeplitz weight W1T[di] : (32, 256)
#   input lane  j_in        = conv1 input column (0..31)
#   output lane 128*bp + co*14 + jp   (bp = pool column phase, co = out channel,
#                                      jp = pooled column; lanes 84..127 of each
#                                      128-chunk are zero padding)
#   entry = w1[co, 0, di, j_in - (2*jp + bp)] when that tap index is in [0, 4].
#
# Layer-2 Toeplitz weight W2T[di] : (128, 256)
#   input lane  ci*14 + j1  (layer-1 output layout; lanes 84..127 zero)
#   output lane 128*b2 + co2*5 + jp2  (lanes 80..127 of each chunk zero)
#   entry = w2[co2, ci, di, j1 - (2*jp2 + b2)] when in range.
# ----------------------------------------------------------------------------
def _build_conv1_gather():
    idx = np.full((5, 32, 256), 6 * 25, dtype=np.int32)        # sentinel -> zero slot
    for di in range(5):
        for bp in range(2):
            for co in range(6):
                for jp in range(14):
                    col = 128 * bp + co * 14 + jp
                    for dj in range(5):
                        j_in = 2 * jp + bp + dj                 # <= 31
                        idx[di, j_in, col] = co * 25 + di * 5 + dj
    return idx


def _build_conv2_gather():
    idx = np.full((5, 128, 256), 16 * 6 * 25, dtype=np.int32)   # sentinel -> zero slot
    for di in range(5):
        for b2 in range(2):
            for co2 in range(16):
                for jp in range(5):
                    col = 128 * b2 + co2 * 5 + jp
                    for ci in range(6):
                        for dj in range(5):
                            row = ci * 14 + (2 * jp + b2 + dj)  # j1 <= 13
                            idx[di, row, col] = ((co2 * 6 + ci) * 5 + di) * 5 + dj
    return idx


_CONV1_IDX = _build_conv1_gather()
_CONV2_IDX = _build_conv2_gather()


# ----------------------------------------------------------------------------
# Fused LeNet5 kernel (one grid step = one batch tile of `rows // 8` images).
# Per-image row layouts (all with 128-padded lanes, zeros in the pad lanes):
#   act1_scr[h] : 8 rows/image, row q <-> pooled row ip1 = 2*q + h (q<=6 valid),
#                 lane co*14 + jp.
#   act2_scr    : 8 rows/image, row ip2 (<=4 valid), lane co2*5 + jp2.
#   out_ref     : 8 rows/image, valid logits at row 0 of each group, lanes 0..9.
# ----------------------------------------------------------------------------
def lenet5_kernel(x_ref, w1t_ref, b1_ref, w2t_ref, b2_ref,
                  wfc1_ref, bfc1_ref, wfc2_ref, bfc2_ref, wfc3_ref, bfc3_ref,
                  out_ref, act1_scr, act2_scr, *, rows):
    f32 = jnp.float32
    bf16 = jnp.bfloat16
    R = rows

    # ---- conv1 + ReLU + 2x2 maxpool, split by pooled-row parity h ------------
    for h in (0, 1):
        col_pooled = []
        for a in (0, 1):                       # pool-window row phase
            acc = None
            for di in range(5):                # conv kernel row tap
                s = 2 * h + a + di             # input row offset within a 4-row group
                xsl = x_ref[0, s % 4, (s // 4):(s // 4) + R, :]            # (R, 32)
                t = jnp.dot(xsl, w1t_ref[di], preferred_element_type=f32)  # (R, 256)
                acc = t if acc is None else acc + t
            # max over the two pool-column phases (128-aligned lane chunks)
            col_pooled.append(jnp.maximum(acc[:, :128], acc[:, 128:]))
        a1 = jnp.maximum(jnp.maximum(col_pooled[0], col_pooled[1]) + b1_ref[...], 0.0)
        act1_scr[h, 0:R, :] = a1.astype(bf16)
        act1_scr[h, R:R + 8, :] = jnp.zeros((8, 128), bf16)     # lookahead pad rows

    # ---- conv2 + ReLU + 2x2 maxpool ------------------------------------------
    pooled2 = []
    for a in (0, 1):
        acc = None
        for di in range(5):
            hh = (a + di) % 2
            off = (a + di) // 2
            xsl = act1_scr[hh, off:off + R, :]                              # (R, 128)
            t = jnp.dot(xsl, w2t_ref[di], preferred_element_type=f32)       # (R, 256)
            acc = t if acc is None else acc + t
        pooled2.append(jnp.maximum(acc[:, :128], acc[:, 128:]))
    a2 = jnp.maximum(jnp.maximum(pooled2[0], pooled2[1]) + b2_ref[...], 0.0)
    act2_scr[0:R, :] = a2.astype(bf16)
    act2_scr[R:R + 8, :] = jnp.zeros((8, 128), bf16)

    # ---- MLP head: fc1(+ReLU), fc2(+ReLU), fc3 --------------------------------
    # fc1 consumes the 5 valid pooled rows per image via a shifted-sum, so the
    # valid result lands at row b*8 of the tile (other rows are discarded later).
    h1 = None
    for ip in range(5):
        t = jnp.dot(act2_scr[ip:ip + R, :], wfc1_ref[ip], preferred_element_type=f32)
        h1 = t if h1 is None else h1 + t
    h1 = jnp.maximum(h1 + bfc1_ref[...], 0.0).astype(bf16)                  # (R, 128)
    h2 = jnp.maximum(jnp.dot(h1, wfc2_ref[...], preferred_element_type=f32)
                     + bfc2_ref[...], 0.0).astype(bf16)                     # (R, 128)
    out_ref[...] = jnp.dot(h2, wfc3_ref[...], preferred_element_type=f32) + bfc3_ref[...]


# ----------------------------------------------------------------------------
# Wrapper: weight packing + input row-phase split (layout plumbing only).
# ----------------------------------------------------------------------------
def _pack_params(p):
    f32 = jnp.float32
    bf16 = jnp.bfloat16

    w1_flat = jnp.concatenate([p["w_conv1"].reshape(-1), jnp.zeros((1,), f32)])
    w1t = w1_flat[_CONV1_IDX].astype(bf16)                                  # (5, 32, 256)
    b1r = jnp.zeros((1, 128), f32).at[0, :84].set(jnp.repeat(p["b_conv1"], 14))

    w2_flat = jnp.concatenate([p["w_conv2"].reshape(-1), jnp.zeros((1,), f32)])
    w2t = w2_flat[_CONV2_IDX].astype(bf16)                                  # (5, 128, 256)
    b2r = jnp.zeros((1, 128), f32).at[0, :80].set(jnp.repeat(p["b_conv2"], 5))

    # fc1: absorb PyTorch's (c, h, w) flatten order and split by pooled row ip2.
    wfc1 = p["w_fc1"].T.reshape(16, 5, 5, 120).transpose(1, 0, 2, 3).reshape(5, 80, 120)
    wfc1 = jnp.pad(wfc1, ((0, 0), (0, 48), (0, 8))).astype(bf16)            # (5, 128, 128)
    bfc1 = jnp.pad(p["b_fc1"], (0, 8)).reshape(1, 128).astype(f32)

    wfc2 = jnp.pad(p["w_fc2"].T, ((0, 8), (0, 44))).astype(bf16)            # (128, 128)
    bfc2 = jnp.pad(p["b_fc2"], (0, 44)).reshape(1, 128).astype(f32)

    wfc3 = jnp.pad(p["w_fc3"].T, ((0, 44), (0, 6))).astype(bf16)            # (128, 16)
    bfc3 = jnp.pad(p["b_fc3"], (0, 6)).reshape(1, 16).astype(f32)

    return w1t, b1r, w2t, b2r, wfc1, bfc1, wfc2, bfc2, wfc3, bfc3


def _batch_tiling(batch):
    # >= 2 grid steps whenever B >= 2 (v7x megacore), <= 256 images per step (VMEM).
    g = max(pl.cdiv(batch, MAX_IMAGES_PER_STEP), 2 if batch >= 2 else 1)
    tb = pl.cdiv(batch, g)
    return tb, g


def lenet5_forward(x, params):
    """x: (B, 1, 32, 32) NCHW float32 -> (B, 10) logits (PyTorch LeNet5 semantics)."""
    B = x.shape[0]
    assert x.shape[1:] == (1, 32, 32), x.shape

    tb, g = _batch_tiling(B)
    b_pad = g * tb
    rows = tb * 8

    # Split image rows mod 4 so every conv/pool row phase in the kernel is a plain,
    # unstrided sublane slice.  This is the only extra pass over the (tiny) input.
    xs = x[:, 0]                                                    # (B, 32, 32)
    xs = jnp.pad(xs, ((0, b_pad - B), (0, 0), (0, 0)))
    xs = xs.reshape(g, tb, 8, 4, 32).transpose(0, 3, 1, 2, 4).reshape(g, 4, rows, 32)
    xs = jnp.pad(xs, ((0, 0), (0, 0), (0, 8), (0, 0))).astype(jnp.bfloat16)

    packed = _pack_params(params)

    out = pl.pallas_call(
        functools.partial(lenet5_kernel, rows=rows),
        out_shape=jax.ShapeDtypeStruct((b_pad * 8, 16), jnp.float32),
        grid=(g,),
        in_specs=[
            pl.BlockSpec((1, 4, rows + 8, 32), lambda i: (i, 0, 0, 0)),  # input tile streams
            pl.BlockSpec((5, 32, 256), lambda i: (0, 0, 0)),             # weights resident
            pl.BlockSpec((1, 128), lambda i: (0, 0)),
            pl.BlockSpec((5, 128, 256), lambda i: (0, 0, 0)),
            pl.BlockSpec((1, 128), lambda i: (0, 0)),
            pl.BlockSpec((5, 128, 128), lambda i: (0, 0, 0)),
            pl.BlockSpec((1, 128), lambda i: (0, 0)),
            pl.BlockSpec((128, 128), lambda i: (0, 0)),
            pl.BlockSpec((1, 128), lambda i: (0, 0)),
            pl.BlockSpec((128, 16), lambda i: (0, 0)),
            pl.BlockSpec((1, 16), lambda i: (0, 0)),
        ],
        out_specs=pl.BlockSpec((rows, 16), lambda i: (i, 0)),
        scratch_shapes=[
            pltpu.VMEM((2, rows + 8, 128), jnp.bfloat16),   # pooled conv1, split by row parity
            pltpu.VMEM((rows + 8, 128), jnp.bfloat16),      # pooled conv2
        ],
        compiler_params=pltpu.CompilerParams(
            dimension_semantics=("parallel",),
            vmem_limit_bytes=32 * 1024 * 1024,
        ),
    )(xs, *packed)

    # Valid logits sit at row 0 of each image's 8-row group, lanes 0..9.
    return out.reshape(b_pad, 8, 16)[:B, 0, :10]


# ----------------------------------------------------------------------------
# Pure-JAX f32 reference (independent of the Pallas path) for validation.
# ----------------------------------------------------------------------------
def lenet5_reference(x, p):
    dn = ("NCHW", "OIHW", "NCHW")
    y = lax.conv_general_dilated(x, p["w_conv1"], (1, 1), "VALID", dimension_numbers=dn)
    y = jnp.maximum(y + p["b_conv1"][None, :, None, None], 0.0)
    y = lax.reduce_window(y, -jnp.inf, lax.max, (1, 1, 2, 2), (1, 1, 2, 2), "VALID")
    y = lax.conv_general_dilated(y, p["w_conv2"], (1, 1), "VALID", dimension_numbers=dn)
    y = jnp.maximum(y + p["b_conv2"][None, :, None, None], 0.0)
    y = lax.reduce_window(y, -jnp.inf, lax.max, (1, 1, 2, 2), (1, 1, 2, 2), "VALID")
    y = y.reshape(y.shape[0], -1)
    y = jnp.maximum(y @ p["w_fc1"].T + p["b_fc1"], 0.0)
    y = jnp.maximum(y @ p["w_fc2"].T + p["b_fc2"], 0.0)
    return y @ p["w_fc3"].T + p["b_fc3"]


# ----------------------------------------------------------------------------
# Deterministic parameter init (PyTorch shapes).
# ----------------------------------------------------------------------------
def init_params(key):
    ks = jax.random.split(key, 10)
    scale = 0.1
    return {
        "w_conv1": scale * jax.random.normal(ks[0], (6, 1, 5, 5), jnp.float32),
        "b_conv1": scale * jax.random.normal(ks[1], (6,), jnp.float32),
        "w_conv2": scale * jax.random.normal(ks[2], (16, 6, 5, 5), jnp.float32),
        "b_conv2": scale * jax.random.normal(ks[3], (16,), jnp.float32),
        "w_fc1": scale * jax.random.normal(ks[4], (120, 400), jnp.float32),
        "b_fc1": scale * jax.random.normal(ks[5], (120,), jnp.float32),
        "w_fc2": scale * jax.random.normal(ks[6], (84, 120), jnp.float32),
        "b_fc2": scale * jax.random.normal(ks[7], (84,), jnp.float32),
        "w_fc3": scale * jax.random.normal(ks[8], (10, 84), jnp.float32),
        "b_fc3": scale * jax.random.normal(ks[9], (10,), jnp.float32),
    }


if __name__ == "__main__":
    key = jax.random.PRNGKey(0)
    k_x, k_p = jax.random.split(key)
    # LeNet5 with a 16*5*5 flatten requires a 32x32 single-channel input.
    x = jax.random.normal(k_x, (2, 1, 32, 32), jnp.float32)
    params = init_params(k_p)

    logits = jax.jit(lenet5_forward)(x, params)
    logits = jax.block_until_ready(logits)

    ref = jax.block_until_ready(lenet5_reference(x, params))
    assert logits.shape == (2, 10), logits.shape
    # bf16 MXU operands / bf16 inter-layer activations vs. f32 reference.
    np.testing.assert_allclose(np.asarray(logits), np.asarray(ref), rtol=5e-2, atol=5e-2)

    print("KERNEL_OK")
</pallas_src>

<mosaic_0001>
module attributes {stable_mosaic.version = 11 : i64} {
  func.func @lenet5_kernel(%arg0: i32, %arg1: memref<1x4x16x32xbf16, #tpu.memory_space<vmem>>, %arg2: memref<5x32x256xbf16, #tpu.memory_space<vmem>>, %arg3: memref<1x128xf32, #tpu.memory_space<vmem>>, %arg4: memref<5x128x256xbf16, #tpu.memory_space<vmem>>, %arg5: memref<1x128xf32, #tpu.memory_space<vmem>>, %arg6: memref<5x128x128xbf16, #tpu.memory_space<vmem>>, %arg7: memref<1x128xf32, #tpu.memory_space<vmem>>, %arg8: memref<128x128xbf16, #tpu.memory_space<vmem>>, %arg9: memref<1x128xf32, #tpu.memory_space<vmem>>, %arg10: memref<128x16xbf16, #tpu.memory_space<vmem>>, %arg11: memref<1x16xf32, #tpu.memory_space<vmem>>, %arg12: memref<8x16xf32, #tpu.memory_space<vmem>>, %arg13: memref<2x16x128xbf16, #tpu.memory_space<vmem>>, %arg14: memref<16x128xbf16, #tpu.memory_space<vmem>>) attributes {dimension_semantics = [#tpu.dimension_semantics<parallel>], iteration_bounds = array<i64: 2>, scalar_prefetch = 0 : i64, scratch_operands = 2 : i64, tpu.core_type = #tpu.core_type<tc>, window_params = [{transform_indices = @transform_0, window_bounds = array<i64: 1, 4, 16, 32>}, {pipeline_mode = #tpu.pipeline_mode<synchronous>, transform_indices = @transform_1, window_bounds = array<i64: 5, 32, 256>}, {pipeline_mode = #tpu.pipeline_mode<synchronous>, transform_indices = @transform_2, window_bounds = array<i64: 1, 128>}, {pipeline_mode = #tpu.pipeline_mode<synchronous>, transform_indices = @transform_3, window_bounds = array<i64: 5, 128, 256>}, {pipeline_mode = #tpu.pipeline_mode<synchronous>, transform_indices = @transform_4, window_bounds = array<i64: 1, 128>}, {pipeline_mode = #tpu.pipeline_mode<synchronous>, transform_indices = @transform_5, window_bounds = array<i64: 5, 128, 128>}, {pipeline_mode = #tpu.pipeline_mode<synchronous>, transform_indices = @transform_6, window_bounds = array<i64: 1, 128>}, {pipeline_mode = #tpu.pipeline_mode<synchronous>, transform_indices = @transform_7, window_bounds = array<i64: 128, 128>}, {pipeline_mode = #tpu.pipeline_mode<synchronous>, transform_indices = @transform_8, window_bounds = array<i64: 1, 128>}, {pipeline_mode = #tpu.pipeline_mode<synchronous>, transform_indices = @transform_9, window_bounds = array<i64: 128, 16>}, {pipeline_mode = #tpu.pipeline_mode<synchronous>, transform_indices = @transform_10, window_bounds = array<i64: 1, 16>}, {transform_indices = @transform_11, window_bounds = array<i64: 8, 16>}]} {
    %c0 = arith.constant 0 : index
    %c0_0 = arith.constant 0 : index
    %c0_1 = arith.constant 0 : index
    %c0_2 = arith.constant 0 : index
    %0 = vector.load %arg1[%c0, %c0_0, %c0_1, %c0_2] : memref<1x4x16x32xbf16, #tpu.memory_space<vmem>>, vector<1x1x8x32xbf16>
    %1 = vector.shape_cast %0 : vector<1x1x8x32xbf16> to vector<8x32xbf16>
    %c0_3 = arith.constant 0 : index
    %c0_4 = arith.constant 0 : index
    %c0_5 = arith.constant 0 : index
    %2 = vector.load %arg2[%c0_3, %c0_4, %c0_5] : memref<5x32x256xbf16, #tpu.memory_space<vmem>>, vector<1x32x256xbf16>
    %3 = vector.shape_cast %2 : vector<1x32x256xbf16> to vector<32x256xbf16>
    %cst = arith.constant dense<0.000000e+00> : vector<8x256xf32>
    %4 = tpu.matmul %1, %3, %cst {dimension_numbers = #tpu.dot_dimension_numbers<[1], [0], [0], [1], [0, 0, 1, 1], [], []>} : vector<8x32xbf16>, vector<32x256xbf16>, vector<8x256xf32> -> vector<8x256xf32>
    %c0_6 = arith.constant 0 : index
    %c1 = arith.constant 1 : index
    %c0_7 = arith.constant 0 : index
    %c0_8 = arith.constant 0 : index
    %5 = vector.load %arg1[%c0_6, %c1, %c0_7, %c0_8] : memref<1x4x16x32xbf16, #tpu.memory_space<vmem>>, vector<1x1x8x32xbf16>
    %6 = vector.shape_cast %5 : vector<1x1x8x32xbf16> to vector<8x32xbf16>
    %c1_9 = arith.constant 1 : index
    %c0_10 = arith.constant 0 : index
    %c0_11 = arith.constant 0 : index
    %7 = vector.load %arg2[%c1_9, %c0_10, %c0_11] : memref<5x32x256xbf16, #tpu.memory_space<vmem>>, vector<1x32x256xbf16>
    %8 = vector.shape_cast %7 : vector<1x32x256xbf16> to vector<32x256xbf16>
    %cst_12 = arith.constant dense<0.000000e+00> : vector<8x256xf32>
    %9 = tpu.matmul %6, %8, %cst_12 {dimension_numbers = #tpu.dot_dimension_numbers<[1], [0], [0], [1], [0, 0, 1, 1], [], []>} : vector<8x32xbf16>, vector<32x256xbf16>, vector<8x256xf32> -> vector<8x256xf32>
    %10 = arith.addf %4, %9 : vector<8x256xf32>
    %c0_13 = arith.constant 0 : index
    %c2 = arith.constant 2 : index
    %c0_14 = arith.constant 0 : index
    %c0_15 = arith.constant 0 : index
    %11 = vector.load %arg1[%c0_13, %c2, %c0_14, %c0_15] : memref<1x4x16x32xbf16, #tpu.memory_space<vmem>>, vector<1x1x8x32xbf16>
    %12 = vector.shape_cast %11 : vector<1x1x8x32xbf16> to vector<8x32xbf16>
    %c2_16 = arith.constant 2 : index
    %c0_17 = arith.constant 0 : index
    %c0_18 = arith.constant 0 : index
    %13 = vector.load %arg2[%c2_16, %c0_17, %c0_18] : memref<5x32x256xbf16, #tpu.memory_space<vmem>>, vector<1x32x256xbf16>
    %14 = vector.shape_cast %13 : vector<1x32x256xbf16> to vector<32x256xbf16>
    %cst_19 = arith.constant dense<0.000000e+00> : vector<8x256xf32>
    %15 = tpu.matmul %12, %14, %cst_19 {dimension_numbers = #tpu.dot_dimension_numbers<[1], [0], [0], [1], [0, 0, 1, 1], [], []>} : vector<8x32xbf16>, vector<32x256xbf16>, vector<8x256xf32> -> vector<8x256xf32>
    %16 = arith.addf %10, %15 : vector<8x256xf32>
    %c0_20 = arith.constant 0 : index
    %c3 = arith.constant 3 : index
    %c0_21 = arith.constant 0 : index
    %c0_22 = arith.constant 0 : index
    %17 = vector.load %arg1[%c0_20, %c3, %c0_21, %c0_22] : memref<1x4x16x32xbf16, #tpu.memory_space<vmem>>, vector<1x1x8x32xbf16>
    %18 = vector.shape_cast %17 : vector<1x1x8x32xbf16> to vector<8x32xbf16>
    %c3_23 = arith.constant 3 : index
    %c0_24 = arith.constant 0 : index
    %c0_25 = arith.constant 0 : index
    %19 = vector.load %arg2[%c3_23, %c0_24, %c0_25] : memref<5x32x256xbf16, #tpu.memory_space<vmem>>, vector<1x32x256xbf16>
    %20 = vector.shape_cast %19 : vector<1x32x256xbf16> to vector<32x256xbf16>
    %cst_26 = arith.constant dense<0.000000e+00> : vector<8x256xf32>
    %21 = tpu.matmul %18, %20, %cst_26 {dimension_numbers = #tpu.dot_dimension_numbers<[1], [0], [0], [1], [0, 0, 1, 1], [], []>} : vector<8x32xbf16>, vector<32x256xbf16>, vector<8x256xf32> -> vector<8x256xf32>
    %22 = arith.addf %16, %21 : vector<8x256xf32>
    %c0_27 = arith.constant 0 : index
    %c0_28 = arith.constant 0 : index
    %c1_29 = arith.constant 1 : index
    %c0_30 = arith.constant 0 : index
    %23 = vector.load %arg1[%c0_27, %c0_28, %c1_29, %c0_30] : memref<1x4x16x32xbf16, #tpu.memory_space<vmem>>, vector<1x1x8x32xbf16>
    %24 = vector.shape_cast %23 : vector<1x1x8x32xbf16> to vector<8x32xbf16>
    %c4 = arith.constant 4 : index
    %c0_31 = arith.constant 0 : index
    %c0_32 = arith.constant 0 : index
    %25 = vector.load %arg2[%c4, %c0_31, %c0_32] : memref<5x32x256xbf16, #tpu.memory_space<vmem>>, vector<1x32x256xbf16>
    %26 = vector.shape_cast %25 : vector<1x32x256xbf16> to vector<32x256xbf16>
    %cst_33 = arith.constant dense<0.000000e+00> : vector<8x256xf32>
    %27 = tpu.matmul %24, %26, %cst_33 {dimension_numbers = #tpu.dot_dimension_numbers<[1], [0], [0], [1], [0, 0, 1, 1], [], []>} : vector<8x32xbf16>, vector<32x256xbf16>, vector<8x256xf32> -> vector<8x256xf32>
    %28 = arith.addf %22, %27 : vector<8x256xf32>
    %29 = vector.extract_strided_slice %28 {offsets = [0, 0], sizes = [8, 128], strides = [1, 1]} : vector<8x256xf32> to vector<8x128xf32>
    %30 = vector.extract_strided_slice %28 {offsets = [0, 128], sizes = [8, 128], strides = [1, 1]} : vector<8x256xf32> to vector<8x128xf32>
    %31 = arith.maximumf %29, %30 : vector<8x128xf32>
    %c0_34 = arith.constant 0 : index
    %c1_35 = arith.constant 1 : index
    %c0_36 = arith.constant 0 : index
    %c0_37 = arith.constant 0 : index
    %32 = vector.load %arg1[%c0_34, %c1_35, %c0_36, %c0_37] : memref<1x4x16x32xbf16, #tpu.memory_space<vmem>>, vector<1x1x8x32xbf16>
    %33 = vector.shape_cast %32 : vector<1x1x8x32xbf16> to vector<8x32xbf16>
    %c0_38 = arith.constant 0 : index
    %c0_39 = arith.constant 0 : index
    %c0_40 = arith.constant 0 : index
    %34 = vector.load %arg2[%c0_38, %c0_39, %c0_40] : memref<5x32x256xbf16, #tpu.memory_space<vmem>>, vector<1x32x256xbf16>
    %35 = vector.shape_cast %34 : vector<1x32x256xbf16> to vector<32x256xbf16>
    %cst_41 = arith.constant dense<0.000000e+00> : vector<8x256xf32>
    %36 = tpu.matmul %33, %35, %cst_41 {dimension_numbers = #tpu.dot_dimension_numbers<[1], [0], [0], [1], [0, 0, 1, 1], [], []>} : vector<8x32xbf16>, vector<32x256xbf16>, vector<8x256xf32> -> vector<8x256xf32>
    %c0_42 = arith.constant 0 : index
    %c2_43 = arith.constant 2 : index
    %c0_44 = arith.constant 0 : index
    %c0_45 = arith.constant 0 : index
    %37 = vector.load %arg1[%c0_42, %c2_43, %c0_44, %c0_45] : memref<1x4x16x32xbf16, #tpu.memory_space<vmem>>, vector<1x1x8x32xbf16>
    %38 = vector.shape_cast %37 : vector<1x1x8x32xbf16> to vector<8x32xbf16>
    %c1_46 = arith.constant 1 : index
    %c0_47 = arith.constant 0 : index
    %c0_48 = arith.constant 0 : index
    %39 = vector.load %arg2[%c1_46, %c0_47, %c0_48] : memref<5x32x256xbf16, #tpu.memory_space<vmem>>, vector<1x32x256xbf16>
    %40 = vector.shape_cast %39 : vector<1x32x256xbf16> to vector<32x256xbf16>
    %cst_49 = arith.constant dense<0.000000e+00> : vector<8x256xf32>
    %41 = tpu.matmul %38, %40, %cst_49 {dimension_numbers = #tpu.dot_dimension_numbers<[1], [0], [0], [1], [0, 0, 1, 1], [], []>} : vector<8x32xbf16>, vector<32x256xbf16>, vector<8x256xf32> -> vector<8x256xf32>
    %42 = arith.addf %36, %41 : vector<8x256xf32>
    %c0_50 = arith.constant 0 : index
    %c3_51 = arith.constant 3 : index
    %c0_52 = arith.constant 0 : index
    %c0_53 = arith.constant 0 : index
    %43 = vector.load %arg1[%c0_50, %c3_51, %c0_52, %c0_53] : memref<1x4x16x32xbf16, #tpu.memory_space<vmem>>, vector<1x1x8x32xbf16>
    %44 = vector.shape_cast %43 : vector<1x1x8x32xbf16> to vector<8x32xbf16>
    %c2_54 = arith.constant 2 : index
    %c0_55 = arith.constant 0 : index
    %c0_56 = arith.constant 0 : index
    %45 = vector.load %arg2[%c2_54, %c0_55, %c0_56] : memref<5x32x256xbf16, #tpu.memory_space<vmem>>, vector<1x32x256xbf16>
    %46 = vector.shape_cast %45 : vector<1x32x256xbf16> to vector<32x256xbf16>
    %cst_57 = arith.constant dense<0.000000e+00> : vector<8x256xf32>
    %47 = tpu.matmul %44, %46, %cst_57 {dimension_numbers = #tpu.dot_dimension_numbers<[1], [0], [0], [1], [0, 0, 1, 1], [], []>} : vector<8x32xbf16>, vector<32x256xbf16>, vector<8x256xf32> -> vector<8x256xf32>
    %48 = arith.addf %42, %47 : vector<8x256xf32>
    %c0_58 = arith.constant 0 : index
    %c0_59 = arith.constant 0 : index
    %c1_60 = arith.constant 1 : index
    %c0_61 = arith.constant 0 : index
    %49 = vector.load %arg1[%c0_58, %c0_59, %c1_60, %c0_61] : memref<1x4x16x32xbf16, #tpu.memory_space<vmem>>, vector<1x1x8x32xbf16>
    %50 = vector.shape_cast %49 : vector<1x1x8x32xbf16> to vector<8x32xbf16>
    %c3_62 = arith.constant 3 : index
    %c0_63 = arith.constant 0 : index
    %c0_64 = arith.constant 0 : index
    %51 = vector.load %arg2[%c3_62, %c0_63, %c0_64] : memref<5x32x256xbf16, #tpu.memory_space<vmem>>, vector<1x32x256xbf16>
    %52 = vector.shape_cast %51 : vector<1x32x256xbf16> to vector<32x256xbf16>
    %cst_65 = arith.constant dense<0.000000e+00> : vector<8x256xf32>
    %53 = tpu.matmul %50, %52, %cst_65 {dimension_numbers = #tpu.dot_dimension_numbers<[1], [0], [0], [1], [0, 0, 1, 1], [], []>} : vector<8x32xbf16>, vector<32x256xbf16>, vector<8x256xf32> -> vector<8x256xf32>
    %54 = arith.addf %48, %53 : vector<8x256xf32>
    %c0_66 = arith.constant 0 : index
    %c1_67 = arith.constant 1 : index
    %c1_68 = arith.constant 1 : index
    %c0_69 = arith.constant 0 : index
    %55 = vector.load %arg1[%c0_66, %c1_67, %c1_68, %c0_69] : memref<1x4x16x32xbf16, #tpu.memory_space<vmem>>, vector<1x1x8x32xbf16>
    %56 = vector.shape_cast %55 : vector<1x1x8x32xbf16> to vector<8x32xbf16>
    %c4_70 = arith.constant 4 : index
    %c0_71 = arith.constant 0 : index
    %c0_72 = arith.constant 0 : index
    %57 = vector.load %arg2[%c4_70, %c0_71, %c0_72] : memref<5x32x256xbf16, #tpu.memory_space<vmem>>, vector<1x32x256xbf16>
    %58 = vector.shape_cast %57 : vector<1x32x256xbf16> to vector<32x256xbf16>
    %cst_73 = arith.constant dense<0.000000e+00> : vector<8x256xf32>
    %59 = tpu.matmul %56, %58, %cst_73 {dimension_numbers = #tpu.dot_dimension_numbers<[1], [0], [0], [1], [0, 0, 1, 1], [], []>} : vector<8x32xbf16>, vector<32x256xbf16>, vector<8x256xf32> -> vector<8x256xf32>
    %60 = arith.addf %54, %59 : vector<8x256xf32>
    %61 = vector.extract_strided_slice %60 {offsets = [0, 0], sizes = [8, 128], strides = [1, 1]} : vector<8x256xf32> to vector<8x128xf32>
    %62 = vector.extract_strided_slice %60 {offsets = [0, 128], sizes = [8, 128], strides = [1, 1]} : vector<8x256xf32> to vector<8x128xf32>
    %63 = arith.maximumf %61, %62 : vector<8x128xf32>
    %64 = arith.maximumf %31, %63 : vector<8x128xf32>
    %c0_74 = arith.constant 0 : index
    %c0_75 = arith.constant 0 : index
    %65 = vector.load %arg3[%c0_74, %c0_75] : memref<1x128xf32, #tpu.memory_space<vmem>>, vector<1x128xf32>
    %66 = vector.broadcast %65 : vector<1x128xf32> to vector<8x128xf32>
    %67 = arith.addf %64, %66 : vector<8x128xf32>
    %cst_76 = arith.constant 0.000000e+00 : f32
    %68 = vector.broadcast %cst_76 : f32 to vector<8x128xf32>
    %69 = arith.maximumf %67, %68 : vector<8x128xf32>
    %70 = arith.truncf %69 : vector<8x128xf32> to vector<8x128xbf16>
    %c0_77 = arith.constant 0 : index
    %c0_78 = arith.constant 0 : index
    %c0_79 = arith.constant 0 : index
    %71 = vector.load %arg13[%c0_77, %c0_78, %c0_79] : memref<2x16x128xbf16, #tpu.memory_space<vmem>>, vector<1x8x128xbf16>
    %72 = vector.shape_cast %71 : vector<1x8x128xbf16> to vector<8x128xbf16>
    %73 = vector.shape_cast %70 : vector<8x128xbf16> to vector<1x8x128xbf16>
    tpu.vector_store %arg13[%c0_77, %c0_78, %c0_79], %73 {strides = array<i32>} : memref<2x16x128xbf16, #tpu.memory_space<vmem>>, vector<1x8x128xbf16>,
    %cst_80 = arith.constant 0.000000e+00 : bf16
    %74 = vector.broadcast %cst_80 : bf16 to vector<8x128xbf16>
    %c0_81 = arith.constant 0 : index
    %c8 = arith.constant 8 : index
    %c0_82 = arith.constant 0 : index
    %75 = vector.load %arg13[%c0_81, %c8, %c0_82] : memref<2x16x128xbf16, #tpu.memory_space<vmem>>, vector<1x8x128xbf16>
    %76 = vector.shape_cast %75 : vector<1x8x128xbf16> to vector<8x128xbf16>
    %77 = vector.shape_cast %74 : vector<8x128xbf16> to vector<1x8x128xbf16>
    tpu.vector_store %arg13[%c0_81, %c8, %c0_82], %77 {strides = array<i32>} : memref<2x16x128xbf16, #tpu.memory_space<vmem>>, vector<1x8x128xbf16>,
    %c0_83 = arith.constant 0 : index
    %c2_84 = arith.constant 2 : index
    %c0_85 = arith.constant 0 : index
    %c0_86 = arith.constant 0 : index
    %78 = vector.load %arg1[%c0_83, %c2_84, %c0_85, %c0_86] : memref<1x4x16x32xbf16, #tpu.memory_space<vmem>>, vector<1x1x8x32xbf16>
    %79 = vector.shape_cast %78 : vector<1x1x8x32xbf16> to vector<8x32xbf16>
    %c0_87 = arith.constant 0 : index
    %c0_88 = arith.constant 0 : index
    %c0_89 = arith.constant 0 : index
    %80 = vector.load %arg2[%c0_87, %c0_88, %c0_89] : memref<5x32x256xbf16, #tpu.memory_space<vmem>>, vector<1x32x256xbf16>
    %81 = vector.shape_cast %80 : vector<1x32x256xbf16> to vector<32x256xbf16>
    %cst_90 = arith.constant dense<0.000000e+00> : vector<8x256xf32>
    %82 = tpu.matmul %79, %81, %cst_90 {dimension_numbers = #tpu.dot_dimension_numbers<[1], [0], [0], [1], [0, 0, 1, 1], [], []>} : vector<8x32xbf16>, vector<32x256xbf16>, vector<8x256xf32> -> vector<8x256xf32>
    %c0_91 = arith.constant 0 : index
    %c3_92 = arith.constant 3 : index
    %c0_93 = arith.constant 0 : index
    %c0_94 = arith.constant 0 : index
    %83 = vector.load %arg1[%c0_91, %c3_92, %c0_93, %c0_94] : memref<1x4x16x32xbf16, #tpu.memory_space<vmem>>, vector<1x1x8x32xbf16>
    %84 = vector.shape_cast %83 : vector<1x1x8x32xbf16> to vector<8x32xbf16>
    %c1_95 = arith.constant 1 : index
    %c0_96 = arith.constant 0 : index
    %c0_97 = arith.constant 0 : index
    %85 = vector.load %arg2[%c1_95, %c0_96, %c0_97] : memref<5x32x256xbf16, #tpu.memory_space<vmem>>, vector<1x32x256xbf16>
    %86 = vector.shape_cast %85 : vector<1x32x256xbf16> to vector<32x256xbf16>
    %cst_98 = arith.constant dense<0.000000e+00> : vector<8x256xf32>
    %87 = tpu.matmul %84, %86, %cst_98 {dimension_numbers = #tpu.dot_dimension_numbers<[1], [0], [0], [1], [0, 0, 1, 1], [], []>} : vector<8x32xbf16>, vector<32x256xbf16>, vector<8x256xf32> -> vector<8x256xf32>
    %88 = arith.addf %82, %87 : vector<8x256xf32>
    %c0_99 = arith.constant 0 : index
    %c0_100 = arith.constant 0 : index
    %c1_101 = arith.constant 1 : index
    %c0_102 = arith.constant 0 : index
    %89 = vector.load %arg1[%c0_99, %c0_100, %c1_101, %c0_102] : memref<1x4x16x32xbf16, #tpu.memory_space<vmem>>, vector<1x1x8x32xbf16>
    %90 = vector.shape_cast %89 : vector<1x1x8x32xbf16> to vector<8x32xbf16>
    %c2_103 = arith.constant 2 : index
    %c0_104 = arith.constant 0 : index
    %c0_105 = arith.constant 0 : index
    %91 = vector.load %arg2[%c2_103, %c0_104, %c0_105] : memref<5x32x256xbf16, #tpu.memory_space<vmem>>, vector<1x32x256xbf16>
    %92 = vector.shape_cast %91 : vector<1x32x256xbf16> to vector<32x256xbf16>
    %cst_106 = arith.constant dense<0.000000e+00> : vector<8x256xf32>
    %93 = tpu.matmul %90, %92, %cst_106 {dimension_numbers = #tpu.dot_dimension_numbers<[1], [0], [0], [1], [0, 0, 1, 1], [], []>} : vector<8x32xbf16>, vector<32x256xbf16>, vector<8x256xf32> -> vector<8x256xf32>
    %94 = arith.addf %88, %93 : vector<8x256xf32>
    %c0_107 = arith.constant 0 : index
    %c1_108 = arith.constant 1 : index
    %c1_109 = arith.constant 1 : index
    %c0_110 = arith.constant 0 : index
    %95 = vector.load %arg1[%c0_107, %c1_108, %c1_109, %c0_110] : memref<1x4x16x32xbf16, #tpu.memory_space<vmem>>, vector<1x1x8x32xbf16>
    %96 = vector.shape_cast %95 : vector<1x1x8x32xbf16> to vector<8x32xbf16>
    %c3_111 = arith.constant 3 : index
    %c0_112 = arith.constant 0 : index
    %c0_113 = arith.constant 0 : index
    %97 = vector.load %arg2[%c3_111, %c0_112, %c0_113] : memref<5x32x256xbf16, #tpu.memory_space<vmem>>, vector<1x32x256xbf16>
    %98 = vector.shape_cast %97 : vector<1x32x256xbf16> to vector<32x256xbf16>
    %cst_114 = arith.constant dense<0.000000e+00> : vector<8x256xf32>
    %99 = tpu.matmul %96, %98, %cst_114 {dimension_numbers = #tpu.dot_dimension_numbers<[1], [0], [0], [1], [0, 0, 1, 1], [], []>} : vector<8x32xbf16>, vector<32x256xbf16>, vector<8x256xf32> -> vector<8x256xf32>
    %100 = arith.addf %94, %99 : vector<8x256xf32>
    %c0_115 = arith.constant 0 : index
    %c2_116 = arith.constant 2 : index
    %c1_117 = arith.constant 1 : index
    %c0_118 = arith.constant 0 : index
    %101 = vector.load %arg1[%c0_115, %c2_116, %c1_117, %c0_118] : memref<1x4x16x32xbf16, #tpu.memory_space<vmem>>, vector<1x1x8x32xbf16>
    %102 = vector.shape_cast %101 : vector<1x1x8x32xbf16> to vector<8x32xbf16>
    %c4_119 = arith.constant 4 : index
    %c0_120 = arith.constant 0 : index
    %c0_121 = arith.constant 0 : index
    %103 = vector.load %arg2[%c4_119, %c0_120, %c0_121] : memref<5x32x256xbf16, #tpu.memory_space<vmem>>, vector<1x32x256xbf16>
    %104 = vector.shape_cast %103 : vector<1x32x256xbf16> to vector<32x256xbf16>
    %cst_122 = arith.constant dense<0.000000e+00> : vector<8x256xf32>
    %105 = tpu.matmul %102, %104, %cst_122 {dimension_numbers = #tpu.dot_dimension_numbers<[1], [0], [0], [1], [0, 0, 1, 1], [], []>} : vector<8x32xbf16>, vector<32x256xbf16>, vector<8x256xf32> -> vector<8x256xf32>
    %106 = arith.addf %100, %105 : vector<8x256xf32>
    %107 = vector.extract_strided_slice %106 {offsets = [0, 0], sizes = [8, 128], strides = [1, 1]} : vector<8x256xf32> to vector<8x128xf32>
    %108 = vector.extract_strided_slice %106 {offsets = [0, 128], sizes = [8, 128], strides = [1, 1]} : vector<8x256xf32> to vector<8x128xf32>
    %109 = arith.maximumf %107, %108 : vector<8x128xf32>
    %c0_123 = arith.constant 0 : index
    %c3_124 = arith.constant 3 : index
    %c0_125 = arith.constant 0 : index
    %c0_126 = arith.constant 0 : index
    %110 = vector.load %arg1[%c0_123, %c3_124, %c0_125, %c0_126] : memref<1x4x16x32xbf16, #tpu.memory_space<vmem>>, vector<1x1x8x32xbf16>
    %111 = vector.shape_cast %110 : vector<1x1x8x32xbf16> to vector<8x32xbf16>
    %c0_127 = arith.constant 0 : index
    %c0_128 = arith.constant 0 : index
    %c0_129 = arith.constant 0 : index
    %112 = vector.load %arg2[%c0_127, %c0_128, %c0_129] : memref<5x32x256xbf16, #tpu.memory_space<vmem>>, vector<1x32x256xbf16>
    %113 = vector.shape_cast %112 : vector<1x32x256xbf16> to vector<32x256xbf16>
    %cst_130 = arith.constant dense<0.000000e+00> : vector<8x256xf32>
    %114 = tpu.matmul %111, %113, %cst_130 {dimension_numbers = #tpu.dot_dimension_numbers<[1], [0], [0], [1], [0, 0, 1, 1], [], []>} : vector<8x32xbf16>, vector<32x256xbf16>, vector<8x256xf32> -> vector<8x256xf32>
    %c0_131 = arith.constant 0 : index
    %c0_132 = arith.constant 0 : index
    %c1_133 = arith.constant 1 : index
    %c0_134 = arith.constant 0 : index
    %115 = vector.load %arg1[%c0_131, %c0_132, %c1_133, %c0_134] : memref<1x4x16x32xbf16, #tpu.memory_space<vmem>>, vector<1x1x8x32xbf16>
    %116 = vector.shape_cast %115 : vector<1x1x8x32xbf16> to vector<8x32xbf16>
    %c1_135 = arith.constant 1 : index
    %c0_136 = arith.constant 0 : index
    %c0_137 = arith.constant 0 : index
    %117 = vector.load %arg2[%c1_135, %c0_136, %c0_137] : memref<5x32x256xbf16, #tpu.memory_space<vmem>>, vector<1x32x256xbf16>
    %118 = vector.shape_cast %117 : vector<1x32x256xbf16> to vector<32x256xbf16>
    %cst_138 = arith.constant dense<0.000000e+00> : vector<8x256xf32>
    %119 = tpu.matmul %116, %118, %cst_138 {dimension_numbers = #tpu.dot_dimension_numbers<[1], [0], [0], [1], [0, 0, 1, 1], [], []>} : vector<8x32xbf16>, vector<32x256xbf16>, vector<8x256xf32> -> vector<8x256xf32>
    %120 = arith.addf %114, %119 : vector<8x256xf32>
    %c0_139 = arith.constant 0 : index
    %c1_140 = arith.constant 1 : index
    %c1_141 = arith.constant 1 : index
    %c0_142 = arith.constant 0 : index
    %121 = vector.load %arg1[%c0_139, %c1_140, %c1_141, %c0_142] : memref<1x4x16x32xbf16, #tpu.memory_space<vmem>>, vector<1x1x8x32xbf16>
    %122 = vector.shape_cast %121 : vector<1x1x8x32xbf16> to vector<8x32xbf16>
    %c2_143 = arith.constant 2 : index
    %c0_144 = arith.constant 0 : index
    %c0_145 = arith.constant 0 : index
    %123 = vector.load %arg2[%c2_143, %c0_144, %c0_145] : memref<5x32x256xbf16, #tpu.memory_space<vmem>>, vector<1x32x256xbf16>
    %124 = vector.shape_cast %123 : vector<1x32x256xbf16> to vector<32x256xbf16>
    %cst_146 = arith.constant dense<0.000000e+00> : vector<8x256xf32>
    %125 = tpu.matmul %122, %124, %cst_146 {dimension_numbers = #tpu.dot_dimension_numbers<[1], [0], [0], [1], [0, 0, 1, 1], [], []>} : vector<8x32xbf16>, vector<32x256xbf16>, vector<8x256xf32> -> vector<8x256xf32>
    %126 = arith.addf %120, %125 : vector<8x256xf32>
    %c0_147 = arith.constant 0 : index
    %c2_148 = arith.constant 2 : index
    %c1_149 = arith.constant 1 : index
    %c0_150 = arith.constant 0 : index
    %127 = vector.load %arg1[%c0_147, %c2_148, %c1_149, %c0_150] : memref<1x4x16x32xbf16, #tpu.memory_space<vmem>>, vector<1x1x8x32xbf16>
    %128 = vector.shape_cast %127 : vector<1x1x8x32xbf16> to vector<8x32xbf16>
    %c3_151 = arith.constant 3 : index
    %c0_152 = arith.constant 0 : index
    %c0_153 = arith.constant 0 : index
    %129 = vector.load %arg2[%c3_151, %c0_152, %c0_153] : memref<5x32x256xbf16, #tpu.memory_space<vmem>>, vector<1x32x256xbf16>
    %130 = vector.shape_cast %129 : vector<1x32x256xbf16> to vector<32x256xbf16>
    %cst_154 = arith.constant dense<0.000000e+00> : vector<8x256xf32>
    %131 = tpu.matmul %128, %130, %cst_154 {dimension_numbers = #tpu.dot_dimension_numbers<[1], [0], [0], [1], [0, 0, 1, 1], [], []>} : vector<8x32xbf16>, vector<32x256xbf16>, vector<8x256xf32> -> vector<8x256xf32>
    %132 = arith.addf %126, %131 : vector<8x256xf32>
    %c0_155 = arith.constant 0 : index
    %c3_156 = arith.constant 3 : index
    %c1_157 = arith.constant 1 : index
    %c0_158 = arith.constant 0 : index
    %133 = vector.load %arg1[%c0_155, %c3_156, %c1_157, %c0_158] : memref<1x4x16x32xbf16, #tpu.memory_space<vmem>>, vector<1x1x8x32xbf16>
    %134 = vector.shape_cast %133 : vector<1x1x8x32xbf16> to vector<8x32xbf16>
    %c4_159 = arith.constant 4 : index
    %c0_160 = arith.constant 0 : index
    %c0_161 = arith.constant 0 : index
    %135 = vector.load %arg2[%c4_159, %c0_160, %c0_161] : memref<5x32x256xbf16, #tpu.memory_space<vmem>>, vector<1x32x256xbf16>
    %136 = vector.shape_cast %135 : vector<1x32x256xbf16> to vector<32x256xbf16>
    %cst_162 = arith.constant dense<0.000000e+00> : vector<8x256xf32>
    %137 = tpu.matmul %134, %136, %cst_162 {dimension_numbers = #tpu.dot_dimension_numbers<[1], [0], [0], [1], [0, 0, 1, 1], [], []>} : vector<8x32xbf16>, vector<32x256xbf16>, vector<8x256xf32> -> vector<8x256xf32>
    %138 = arith.addf %132, %137 : vector<8x256xf32>
    %139 = vector.extract_strided_slice %138 {offsets = [0, 0], sizes = [8, 128], strides = [1, 1]} : vector<8x256xf32> to vector<8x128xf32>
    %140 = vector.extract_strided_slice %138 {offsets = [0, 128], sizes = [8, 128], strides = [1, 1]} : vector<8x256xf32> to vector<8x128xf32>
    %141 = arith.maximumf %139, %140 : vector<8x128xf32>
    %142 = arith.maximumf %109, %141 : vector<8x128xf32>
    %c0_163 = arith.constant 0 : index
    %c0_164 = arith.constant 0 : index
    %143 = vector.load %arg3[%c0_163, %c0_164] : memref<1x128xf32, #tpu.memory_space<vmem>>, vector<1x128xf32>
    %144 = vector.broadcast %143 : vector<1x128xf32> to vector<8x128xf32>
    %145 = arith.addf %142, %144 : vector<8x128xf32>
    %cst_165 = arith.constant 0.000000e+00 : f32
    %146 = vector.broadcast %cst_165 : f32 to vector<8x128xf32>
    %147 = arith.maximumf %145, %146 : vector<8x128xf32>
    %148 = arith.truncf %147 : vector<8x128xf32> to vector<8x128xbf16>
    %c1_166 = arith.constant 1 : index
    %c0_167 = arith.constant 0 : index
    %c0_168 = arith.constant 0 : index
    %149 = vector.load %arg13[%c1_166, %c0_167, %c0_168] : memref<2x16x128xbf16, #tpu.memory_space<vmem>>, vector<1x8x128xbf16>
    %150 = vector.shape_cast %149 : vector<1x8x128xbf16> to vector<8x128xbf16>
    %151 = vector.shape_cast %148 : vector<8x128xbf16> to vector<1x8x128xbf16>
    tpu.vector_store %arg13[%c1_166, %c0_167, %c0_168], %151 {strides = array<i32>} : memref<2x16x128xbf16, #tpu.memory_space<vmem>>, vector<1x8x128xbf16>,
    %cst_169 = arith.constant 0.000000e+00 : bf16
    %152 = vector.broadcast %cst_169 : bf16 to vector<8x128xbf16>
    %c1_170 = arith.constant 1 : index
    %c8_171 = arith.constant 8 : index
    %c0_172 = arith.constant 0 : index
    %153 = vector.load %arg13[%c1_170, %c8_171, %c0_172] : memref<2x16x128xbf16, #tpu.memory_space<vmem>>, vector<1x8x128xbf16>
    %154 = vector.shape_cast %153 : vector<1x8x128xbf16> to vector<8x128xbf16>
    %155 = vector.shape_cast %152 : vector<8x128xbf16> to vector<1x8x128xbf16>
    tpu.vector_store %arg13[%c1_170, %c8_171, %c0_172], %155 {strides = array<i32>} : memref<2x16x128xbf16, #tpu.memory_space<vmem>>, vector<1x8x128xbf16>,
    %c0_173 = arith.constant 0 : index
    %c0_174 = arith.constant 0 : index
    %c0_175 = arith.constant 0 : index
    %156 = vector.load %arg13[%c0_173, %c0_174, %c0_175] : memref<2x16x128xbf16, #tpu.memory_space<vmem>>, vector<1x8x128xbf16>
    %157 = vector.shape_cast %156 : vector<1x8x128xbf16> to vector<8x128xbf16>
    %c0_176 = arith.constant 0 : index
    %c0_177 = arith.constant 0 : index
    %c0_178 = arith.constant 0 : index
    %158 = vector.load %arg4[%c0_176, %c0_177, %c0_178] : memref<5x128x256xbf16, #tpu.memory_space<vmem>>, vector<1x128x256xbf16>
    %159 = vector.shape_cast %158 : vector<1x128x256xbf16> to vector<128x256xbf16>
    %cst_179 = arith.constant dense<0.000000e+00> : vector<8x256xf32>
    %160 = tpu.matmul %157, %159, %cst_179 {dimension_numbers = #tpu.dot_dimension_numbers<[1], [0], [0], [1], [0, 0, 1, 1], [], []>} : vector<8x128xbf16>, vector<128x256xbf16>, vector<8x256xf32> -> vector<8x256xf32>
    %c1_180 = arith.constant 1 : index
    %c0_181 = arith.constant 0 : index
    %c0_182 = arith.constant 0 : index
    %161 = vector.load %arg13[%c1_180, %c0_181, %c0_182] : memref<2x16x128xbf16, #tpu.memory_space<vmem>>, vector<1x8x128xbf16>
    %162 = vector.shape_cast %161 : vector<1x8x128xbf16> to vector<8x128xbf16>
    %c1_183 = arith.constant 1 : index
    %c0_184 = arith.constant 0 : index
    %c0_185 = arith.constant 0 : index
    %163 = vector.load %arg4[%c1_183, %c0_184, %c0_185] : memref<5x128x256xbf16, #tpu.memory_space<vmem>>, vector<1x128x256xbf16>
    %164 = vector.shape_cast %163 : vector<1x128x256xbf16> to vector<128x256xbf16>
    %cst_186 = arith.constant dense<0.000000e+00> : vector<8x256xf32>
    %165 = tpu.matmul %162, %164, %cst_186 {dimension_numbers = #tpu.dot_dimension_numbers<[1], [0], [0], [1], [0, 0, 1, 1], [], []>} : vector<8x128xbf16>, vector<128x256xbf16>, vector<8x256xf32> -> vector<8x256xf32>
    %166 = arith.addf %160, %165 : vector<8x256xf32>
    %c0_187 = arith.constant 0 : index
    %c1_188 = arith.constant 1 : index
    %c0_189 = arith.constant 0 : index
    %167 = vector.load %arg13[%c0_187, %c1_188, %c0_189] : memref<2x16x128xbf16, #tpu.memory_space<vmem>>, vector<1x8x128xbf16>
    %168 = vector.shape_cast %167 : vector<1x8x128xbf16> to vector<8x128xbf16>
    %c2_190 = arith.constant 2 : index
    %c0_191 = arith.constant 0 : index
    %c0_192 = arith.constant 0 : index
    %169 = vector.load %arg4[%c2_190, %c0_191, %c0_192] : memref<5x128x256xbf16, #tpu.memory_space<vmem>>, vector<1x128x256xbf16>
    %170 = vector.shape_cast %169 : vector<1x128x256xbf16> to vector<128x256xbf16>
    %cst_193 = arith.constant dense<0.000000e+00> : vector<8x256xf32>
    %171 = tpu.matmul %168, %170, %cst_193 {dimension_numbers = #tpu.dot_dimension_numbers<[1], [0], [0], [1], [0, 0, 1, 1], [], []>} : vector<8x128xbf16>, vector<128x256xbf16>, vector<8x256xf32> -> vector<8x256xf32>
    %172 = arith.addf %166, %171 : vector<8x256xf32>
    %c1_194 = arith.constant 1 : index
    %c1_195 = arith.constant 1 : index
    %c0_196 = arith.constant 0 : index
    %173 = vector.load %arg13[%c1_194, %c1_195, %c0_196] : memref<2x16x128xbf16, #tpu.memory_space<vmem>>, vector<1x8x128xbf16>
    %174 = vector.shape_cast %173 : vector<1x8x128xbf16> to vector<8x128xbf16>
    %c3_197 = arith.constant 3 : index
    %c0_198 = arith.constant 0 : index
    %c0_199 = arith.constant 0 : index
    %175 = vector.load %arg4[%c3_197, %c0_198, %c0_199] : memref<5x128x256xbf16, #tpu.memory_space<vmem>>, vector<1x128x256xbf16>
    %176 = vector.shape_cast %175 : vector<1x128x256xbf16> to vector<128x256xbf16>
    %cst_200 = arith.constant dense<0.000000e+00> : vector<8x256xf32>
    %177 = tpu.matmul %174, %176, %cst_200 {dimension_numbers = #tpu.dot_dimension_numbers<[1], [0], [0], [1], [0, 0, 1, 1], [], []>} : vector<8x128xbf16>, vector<128x256xbf16>, vector<8x256xf32> -> vector<8x256xf32>
    %178 = arith.addf %172, %177 : vector<8x256xf32>
    %c0_201 = arith.constant 0 : index
    %c2_202 = arith.constant 2 : index
    %c0_203 = arith.constant 0 : index
    %179 = vector.load %arg13[%c0_201, %c2_202, %c0_203] : memref<2x16x128xbf16, #tpu.memory_space<vmem>>, vector<1x8x128xbf16>
    %180 = vector.shape_cast %179 : vector<1x8x128xbf16> to vector<8x128xbf16>
    %c4_204 = arith.constant 4 : index
    %c0_205 = arith.constant 0 : index
    %c0_206 = arith.constant 0 : index
    %181 = vector.load %arg4[%c4_204, %c0_205, %c0_206] : memref<5x128x256xbf16, #tpu.memory_space<vmem>>, vector<1x128x256xbf16>
    %182 = vector.shape_cast %181 : vector<1x128x256xbf16> to vector<128x256xbf16>
    %cst_207 = arith.constant dense<0.000000e+00> : vector<8x256xf32>
    %183 = tpu.matmul %180, %182, %cst_207 {dimension_numbers = #tpu.dot_dimension_numbers<[1], [0], [0], [1], [0, 0, 1, 1], [], []>} : vector<8x128xbf16>, vector<128x256xbf16>, vector<8x256xf32> -> vector<8x256xf32>
    %184 = arith.addf %178, %183 : vector<8x256xf32>
    %185 = vector.extract_strided_slice %184 {offsets = [0, 0], sizes = [8, 128], strides = [1, 1]} : vector<8x256xf32> to vector<8x128xf32>
    %186 = vector.extract_strided_slice %184 {offsets = [0, 128], sizes = [8, 128], strides = [1, 1]} : vector<8x256xf32> to vector<8x128xf32>
    %187 = arith.maximumf %185, %186 : vector<8x128xf32>
    %c1_208 = arith.constant 1 : index
    %c0_209 = arith.constant 0 : index
    %c0_210 = arith.constant 0 : index
    %188 = vector.load %arg13[%c1_208, %c0_209, %c0_210] : memref<2x16x128xbf16, #tpu.memory_space<vmem>>, vector<1x8x128xbf16>
    %189 = vector.shape_cast %188 : vector<1x8x128xbf16> to vector<8x128xbf16>
    %c0_211 = arith.constant 0 : index
    %c0_212 = arith.constant 0 : index
    %c0_213 = arith.constant 0 : index
    %190 = vector.load %arg4[%c0_211, %c0_212, %c0_213] : memref<5x128x256xbf16, #tpu.memory_space<vmem>>, vector<1x128x256xbf16>
    %191 = vector.shape_cast %190 : vector<1x128x256xbf16> to vector<128x256xbf16>
    %cst_214 = arith.constant dense<0.000000e+00> : vector<8x256xf32>
    %192 = tpu.matmul %189, %191, %cst_214 {dimension_numbers = #tpu.dot_dimension_numbers<[1], [0], [0], [1], [0, 0, 1, 1], [], []>} : vector<8x128xbf16>, vector<128x256xbf16>, vector<8x256xf32> -> vector<8x256xf32>
    %c0_215 = arith.constant 0 : index
    %c1_216 = arith.constant 1 : index
    %c0_217 = arith.constant 0 : index
    %193 = vector.load %arg13[%c0_215, %c1_216, %c0_217] : memref<2x16x128xbf16, #tpu.memory_space<vmem>>, vector<1x8x128xbf16>
    %194 = vector.shape_cast %193 : vector<1x8x128xbf16> to vector<8x128xbf16>
    %c1_218 = arith.constant 1 : index
    %c0_219 = arith.constant 0 : index
    %c0_220 = arith.constant 0 : index
    %195 = vector.load %arg4[%c1_218, %c0_219, %c0_220] : memref<5x128x256xbf16, #tpu.memory_space<vmem>>, vector<1x128x256xbf16>
    %196 = vector.shape_cast %195 : vector<1x128x256xbf16> to vector<128x256xbf16>
    %cst_221 = arith.constant dense<0.000000e+00> : vector<8x256xf32>
    %197 = tpu.matmul %194, %196, %cst_221 {dimension_numbers = #tpu.dot_dimension_numbers<[1], [0], [0], [1], [0, 0, 1, 1], [], []>} : vector<8x128xbf16>, vector<128x256xbf16>, vector<8x256xf32> -> vector<8x256xf32>
    %198 = arith.addf %192, %197 : vector<8x256xf32>
    %c1_222 = arith.constant 1 : index
    %c1_223 = arith.constant 1 : index
    %c0_224 = arith.constant 0 : index
    %199 = vector.load %arg13[%c1_222, %c1_223, %c0_224] : memref<2x16x128xbf16, #tpu.memory_space<vmem>>, vector<1x8x128xbf16>
    %200 = vector.shape_cast %199 : vector<1x8x128xbf16> to vector<8x128xbf16>
    %c2_225 = arith.constant 2 : index
    %c0_226 = arith.constant 0 : index
    %c0_227 = arith.constant 0 : index
    %201 = vector.load %arg4[%c2_225, %c0_226, %c0_227] : memref<5x128x256xbf16, #tpu.memory_space<vmem>>, vector<1x128x256xbf16>
    %202 = vector.shape_cast %201 : vector<1x128x256xbf16> to vector<128x256xbf16>
    %cst_228 = arith.constant dense<0.000000e+00> : vector<8x256xf32>
    %203 = tpu.matmul %200, %202, %cst_228 {dimension_numbers = #tpu.dot_dimension_numbers<[1], [0], [0], [1], [0, 0, 1, 1], [], []>} : vector<8x128xbf16>, vector<128x256xbf16>, vector<8x256xf32> -> vector<8x256xf32>
    %204 = arith.addf %198, %203 : vector<8x256xf32>
    %c0_229 = arith.constant 0 : index
    %c2_230 = arith.constant 2 : index
    %c0_231 = arith.constant 0 : index
    %205 = vector.load %arg13[%c0_229, %c2_230, %c0_231] : memref<2x16x128xbf16, #tpu.memory_space<vmem>>, vector<1x8x128xbf16>
    %206 = vector.shape_cast %205 : vector<1x8x128xbf16> to vector<8x128xbf16>
    %c3_232 = arith.constant 3 : index
    %c0_233 = arith.constant 0 : index
    %c0_234 = arith.constant 0 : index
    %207 = vector.load %arg4[%c3_232, %c0_233, %c0_234] : memref<5x128x256xbf16, #tpu.memory_space<vmem>>, vector<1x128x256xbf16>
    %208 = vector.shape_cast %207 : vector<1x128x256xbf16> to vector<128x256xbf16>
    %cst_235 = arith.constant dense<0.000000e+00> : vector<8x256xf32>
    %209 = tpu.matmul %206, %208, %cst_235 {dimension_numbers = #tpu.dot_dimension_numbers<[1], [0], [0], [1], [0, 0, 1, 1], [], []>} : vector<8x128xbf16>, vector<128x256xbf16>, vector<8x256xf32> -> vector<8x256xf32>
    %210 = arith.addf %204, %209 : vector<8x256xf32>
    %c1_236 = arith.constant 1 : index
    %c2_237 = arith.constant 2 : index
    %c0_238 = arith.constant 0 : index
    %211 = vector.load %arg13[%c1_236, %c2_237, %c0_238] : memref<2x16x128xbf16, #tpu.memory_space<vmem>>, vector<1x8x128xbf16>
    %212 = vector.shape_cast %211 : vector<1x8x128xbf16> to vector<8x128xbf16>
    %c4_239 = arith.constant 4 : index
    %c0_240 = arith.constant 0 : index
    %c0_241 = arith.constant 0 : index
    %213 = vector.load %arg4[%c4_239, %c0_240, %c0_241] : memref<5x128x256xbf16, #tpu.memory_space<vmem>>, vector<1x128x256xbf16>
    %214 = vector.shape_cast %213 : vector<1x128x256xbf16> to vector<128x256xbf16>
    %cst_242 = arith.constant dense<0.000000e+00> : vector<8x256xf32>
    %215 = tpu.matmul %212, %214, %cst_242 {dimension_numbers = #tpu.dot_dimension_numbers<[1], [0], [0], [1], [0, 0, 1, 1], [], []>} : vector<8x128xbf16>, vector<128x256xbf16>, vector<8x256xf32> -> vector<8x256xf32>
    %216 = arith.addf %210, %215 : vector<8x256xf32>
    %217 = vector.extract_strided_slice %216 {offsets = [0, 0], sizes = [8, 128], strides = [1, 1]} : vector<8x256xf32> to vector<8x128xf32>
    %218 = vector.extract_strided_slice %216 {offsets = [0, 128], sizes = [8, 128], strides = [1, 1]} : vector<8x256xf32> to vector<8x128xf32>
    %219 = arith.maximumf %217, %218 : vector<8x128xf32>
    %220 = arith.maximumf %187, %219 : vector<8x128xf32>
    %c0_243 = arith.constant 0 : index
    %c0_244 = arith.constant 0 : index
    %221 = vector.load %arg5[%c0_243, %c0_244] : memref<1x128xf32, #tpu.memory_space<vmem>>, vector<1x128xf32>
    %222 = vector.broadcast %221 : vector<1x128xf32> to vector<8x128xf32>
    %223 = arith.addf %220, %222 : vector<8x128xf32>
    %cst_245 = arith.constant 0.000000e+00 : f32
    %224 = vector.broadcast %cst_245 : f32 to vector<8x128xf32>
    %225 = arith.maximumf %223, %224 : vector<8x128xf32>
    %226 = arith.truncf %225 : vector<8x128xf32> to vector<8x128xbf16>
    %c0_246 = arith.constant 0 : index
    %c0_247 = arith.constant 0 : index
    %227 = vector.load %arg14[%c0_246, %c0_247] : memref<16x128xbf16, #tpu.memory_space<vmem>>, vector<8x128xbf16>
    tpu.vector_store %arg14[%c0_246, %c0_247], %226 {strides = array<i32>} : memref<16x128xbf16, #tpu.memory_space<vmem>>, vector<8x128xbf16>,
    %cst_248 = arith.constant 0.000000e+00 : bf16
    %228 = vector.broadcast %cst_248 : bf16 to vector<8x128xbf16>
    %c8_249 = arith.constant 8 : index
    %c0_250 = arith.constant 0 : index
    %229 = vector.load %arg14[%c8_249, %c0_250] : memref<16x128xbf16, #tpu.memory_space<vmem>>, vector<8x128xbf16>
    tpu.vector_store %arg14[%c8_249, %c0_250], %228 {strides = array<i32>} : memref<16x128xbf16, #tpu.memory_space<vmem>>, vector<8x128xbf16>,
    %c0_251 = arith.constant 0 : index
    %c0_252 = arith.constant 0 : index
    %230 = vector.load %arg14[%c0_251, %c0_252] : memref<16x128xbf16, #tpu.memory_space<vmem>>, vector<8x128xbf16>
    %c0_253 = arith.constant 0 : index
    %c0_254 = arith.constant 0 : index
    %c0_255 = arith.constant 0 : index
    %231 = vector.load %arg6[%c0_253, %c0_254, %c0_255] : memref<5x128x128xbf16, #tpu.memory_space<vmem>>, vector<1x128x128xbf16>
    %232 = vector.shape_cast %231 : vector<1x128x128xbf16> to vector<128x128xbf16>
    %cst_256 = arith.constant dense<0.000000e+00> : vector<8x128xf32>
    %233 = tpu.matmul %230, %232, %cst_256 {dimension_numbers = #tpu.dot_dimension_numbers<[1], [0], [0], [1], [0, 0, 1, 1], [], []>} : vector<8x128xbf16>, vector<128x128xbf16>, vector<8x128xf32> -> vector<8x128xf32>
    %c1_257 = arith.constant 1 : index
    %c0_258 = arith.constant 0 : index
    %234 = vector.load %arg14[%c1_257, %c0_258] : memref<16x128xbf16, #tpu.memory_space<vmem>>, vector<8x128xbf16>
    %c1_259 = arith.constant 1 : index
    %c0_260 = arith.constant 0 : index
    %c0_261 = arith.constant 0 : index
    %235 = vector.load %arg6[%c1_259, %c0_260, %c0_261] : memref<5x128x128xbf16, #tpu.memory_space<vmem>>, vector<1x128x128xbf16>
    %236 = vector.shape_cast %235 : vector<1x128x128xbf16> to vector<128x128xbf16>
    %cst_262 = arith.constant dense<0.000000e+00> : vector<8x128xf32>
    %237 = tpu.matmul %234, %236, %cst_262 {dimension_numbers = #tpu.dot_dimension_numbers<[1], [0], [0], [1], [0, 0, 1, 1], [], []>} : vector<8x128xbf16>, vector<128x128xbf16>, vector<8x128xf32> -> vector<8x128xf32>
    %238 = arith.addf %233, %237 : vector<8x128xf32>
    %c2_263 = arith.constant 2 : index
    %c0_264 = arith.constant 0 : index
    %239 = vector.load %arg14[%c2_263, %c0_264] : memref<16x128xbf16, #tpu.memory_space<vmem>>, vector<8x128xbf16>
    %c2_265 = arith.constant 2 : index
    %c0_266 = arith.constant 0 : index
    %c0_267 = arith.constant 0 : index
    %240 = vector.load %arg6[%c2_265, %c0_266, %c0_267] : memref<5x128x128xbf16, #tpu.memory_space<vmem>>, vector<1x128x128xbf16>
    %241 = vector.shape_cast %240 : vector<1x128x128xbf16> to vector<128x128xbf16>
    %cst_268 = arith.constant dense<0.000000e+00> : vector<8x128xf32>
    %242 = tpu.matmul %239, %241, %cst_268 {dimension_numbers = #tpu.dot_dimension_numbers<[1], [0], [0], [1], [0, 0, 1, 1], [], []>} : vector<8x128xbf16>, vector<128x128xbf16>, vector<8x128xf32> -> vector<8x128xf32>
    %243 = arith.addf %238, %242 : vector<8x128xf32>
    %c3_269 = arith.constant 3 : index
    %c0_270 = arith.constant 0 : index
    %244 = vector.load %arg14[%c3_269, %c0_270] : memref<16x128xbf16, #tpu.memory_space<vmem>>, vector<8x128xbf16>
    %c3_271 = arith.constant 3 : index
    %c0_272 = arith.constant 0 : index
    %c0_273 = arith.constant 0 : index
    %245 = vector.load %arg6[%c3_271, %c0_272, %c0_273] : memref<5x128x128xbf16, #tpu.memory_space<vmem>>, vector<1x128x128xbf16>
    %246 = vector.shape_cast %245 : vector<1x128x128xbf16> to vector<128x128xbf16>
    %cst_274 = arith.constant dense<0.000000e+00> : vector<8x128xf32>
    %247 = tpu.matmul %244, %246, %cst_274 {dimension_numbers = #tpu.dot_dimension_numbers<[1], [0], [0], [1], [0, 0, 1, 1], [], []>} : vector<8x128xbf16>, vector<128x128xbf16>, vector<8x128xf32> -> vector<8x128xf32>
    %248 = arith.addf %243, %247 : vector<8x128xf32>
    %c4_275 = arith.constant 4 : index
    %c0_276 = arith.constant 0 : index
    %249 = vector.load %arg14[%c4_275, %c0_276] : memref<16x128xbf16, #tpu.memory_space<vmem>>, vector<8x128xbf16>
    %c4_277 = arith.constant 4 : index
    %c0_278 = arith.constant 0 : index
    %c0_279 = arith.constant 0 : index
    %250 = vector.load %arg6[%c4_277, %c0_278, %c0_279] : memref<5x128x128xbf16, #tpu.memory_space<vmem>>, vector<1x128x128xbf16>
    %251 = vector.shape_cast %250 : vector<1x128x128xbf16> to vector<128x128xbf16>
    %cst_280 = arith.constant dense<0.000000e+00> : vector<8x128xf32>
    %252 = tpu.matmul %249, %251, %cst_280 {dimension_numbers = #tpu.dot_dimension_numbers<[1], [0], [0], [1], [0, 0, 1, 1], [], []>} : vector<8x128xbf16>, vector<128x128xbf16>, vector<8x128xf32> -> vector<8x128xf32>
    %253 = arith.addf %248, %252 : vector<8x128xf32>
    %c0_281 = arith.constant 0 : index
    %c0_282 = arith.constant 0 : index
    %254 = vector.load %arg7[%c0_281, %c0_282] : memref<1x128xf32, #tpu.memory_space<vmem>>, vector<1x128xf32>
    %255 = vector.broadcast %254 : vector<1x128xf32> to vector<8x128xf32>
    %256 = arith.addf %253, %255 : vector<8x128xf32>
    %cst_283 = arith.constant 0.000000e+00 : f32
    %257 = vector.broadcast %cst_283 : f32 to vector<8x128xf32>
    %258 = arith.maximumf %256, %257 : vector<8x128xf32>
    %259 = arith.truncf %258 : vector<8x128xf32> to vector<8x128xbf16>
    %c0_284 = arith.constant 0 : index
    %c0_285 = arith.constant 0 : index
    %260 = vector.load %arg8[%c0_284, %c0_285] : memref<128x128xbf16, #tpu.memory_space<vmem>>, vector<128x128xbf16>
    %cst_286 = arith.constant dense<0.000000e+00> : vector<8x128xf32>
    %261 = tpu.matmul %259, %260, %cst_286 {dimension_numbers = #tpu.dot_dimension_numbers<[1], [0], [0], [1], [0, 0, 1, 1], [], []>} : vector<8x128xbf16>, vector<128x128xbf16>, vector<8x128xf32> -> vector<8x128xf32>
    %c0_287 = arith.constant 0 : index
    %c0_288 = arith.constant 0 : index
    %262 = vector.load %arg9[%c0_287, %c0_288] : memref<1x128xf32, #tpu.memory_space<vmem>>, vector<1x128xf32>
    %263 = vector.broadcast %262 : vector<1x128xf32> to vector<8x128xf32>
    %264 = arith.addf %261, %263 : vector<8x128xf32>
    %cst_289 = arith.constant 0.000000e+00 : f32
    %265 = vector.broadcast %cst_289 : f32 to vector<8x128xf32>
    %266 = arith.maximumf %264, %265 : vector<8x128xf32>
    %267 = arith.truncf %266 : vector<8x128xf32> to vector<8x128xbf16>
    %c0_290 = arith.constant 0 : index
    %c0_291 = arith.constant 0 : index
    %268 = vector.load %arg10[%c0_290, %c0_291] : memref<128x16xbf16, #tpu.memory_space<vmem>>, vector<128x16xbf16>
    %cst_292 = arith.constant dense<0.000000e+00> : vector<8x16xf32>
    %269 = tpu.matmul %267, %268, %cst_292 {dimension_numbers = #tpu.dot_dimension_numbers<[1], [0], [0], [1], [0, 0, 1, 1], [], []>} : vector<8x128xbf16>, vector<128x16xbf16>, vector<8x16xf32> -> vector<8x16xf32>
    %c0_293 = arith.constant 0 : index
    %c0_294 = arith.constant 0 : index
    %270 = vector.load %arg11[%c0_293, %c0_294] : memref<1x16xf32, #tpu.memory_space<vmem>>, vector<1x16xf32>
    %271 = vector.broadcast %270 : vector<1x16xf32> to vector<8x16xf32>
    %272 = arith.addf %269, %271 : vector<8x16xf32>
    %c0_295 = arith.constant 0 : index
    %c0_296 = arith.constant 0 : index
    %273 = vector.load %arg12[%c0_295, %c0_296] : memref<8x16xf32, #tpu.memory_space<vmem>>, vector<8x16xf32>
    tpu.vector_store %arg12[%c0_295, %c0_296], %272 {strides = array<i32>} : memref<8x16xf32, #tpu.memory_space<vmem>>, vector<8x16xf32>,
    return
  }
  func.func @transform_0(%arg0: i32) -> (i32, i32, i32, i32) {
    %c0_i32 = arith.constant 0 : i32
    %c0_i32_0 = arith.constant 0 : i32
    %c0_i32_1 = arith.constant 0 : i32
    %c0_i32_2 = arith.constant 0 : i32
    return %arg0, %c0_i32, %c0_i32_0, %c0_i32_1 : i32, i32, i32, i32
  }
  func.func @transform_1(%arg0: i32) -> (i32, i32, i32) {
    %c0_i32 = arith.constant 0 : i32
    %c0_i32_0 = arith.constant 0 : i32
    %c0_i32_1 = arith.constant 0 : i32
    %c0_i32_2 = arith.constant 0 : i32
    return %c0_i32, %c0_i32_0, %c0_i32_1 : i32, i32, i32
  }
  func.func @transform_2(%arg0: i32) -> (i32, i32) {
    %c0_i32 = arith.constant 0 : i32
    %c0_i32_0 = arith.constant 0 : i32
    %c0_i32_1 = arith.constant 0 : i32
    return %c0_i32, %c0_i32_0 : i32, i32
  }
  func.func @transform_3(%arg0: i32) -> (i32, i32, i32) {
    %c0_i32 = arith.constant 0 : i32
    %c0_i32_0 = arith.constant 0 : i32
    %c0_i32_1 = arith.constant 0 : i32
    %c0_i32_2 = arith.constant 0 : i32
    return %c0_i32, %c0_i32_0, %c0_i32_1 : i32, i32, i32
  }
  func.func @transform_4(%arg0: i32) -> (i32, i32) {
    %c0_i32 = arith.constant 0 : i32
    %c0_i32_0 = arith.constant 0 : i32
    %c0_i32_1 = arith.constant 0 : i32
    return %c0_i32, %c0_i32_0 : i32, i32
  }
  func.func @transform_5(%arg0: i32) -> (i32, i32, i32) {
    %c0_i32 = arith.constant 0 : i32
    %c0_i32_0 = arith.constant 0 : i32
    %c0_i32_1 = arith.constant 0 : i32
    %c0_i32_2 = arith.constant 0 : i32
    return %c0_i32, %c0_i32_0, %c0_i32_1 : i32, i32, i32
  }
  func.func @transform_6(%arg0: i32) -> (i32, i32) {
    %c0_i32 = arith.constant 0 : i32
    %c0_i32_0 = arith.constant 0 : i32
    %c0_i32_1 = arith.constant 0 : i32
    return %c0_i32, %c0_i32_0 : i32, i32
  }
  func.func @transform_7(%arg0: i32) -> (i32, i32) {
    %c0_i32 = arith.constant 0 : i32
    %c0_i32_0 = arith.constant 0 : i32
    %c0_i32_1 = arith.constant 0 : i32
    return %c0_i32, %c0_i32_0 : i32, i32
  }
  func.func @transform_8(%arg0: i32) -> (i32, i32) {
    %c0_i32 = arith.constant 0 : i32
    %c0_i32_0 = arith.constant 0 : i32
    %c0_i32_1 = arith.constant 0 : i32
    return %c0_i32, %c0_i32_0 : i32, i32
  }
  func.func @transform_9(%arg0: i32) -> (i32, i32) {
    %c0_i32 = arith.constant 0 : i32
    %c0_i32_0 = arith.constant 0 : i32
    %c0_i32_1 = arith.constant 0 : i32
    return %c0_i32, %c0_i32_0 : i32, i32
  }
  func.func @transform_10(%arg0: i32) -> (i32, i32) {
    %c0_i32 = arith.constant 0 : i32
    %c0_i32_0 = arith.constant 0 : i32
    %c0_i32_1 = arith.constant 0 : i32
    return %c0_i32, %c0_i32_0 : i32, i32
  }
  func.func @transform_11(%arg0: i32) -> (i32, i32) {
    %c0_i32 = arith.constant 0 : i32
    %c0_i32_0 = arith.constant 0 : i32
    return %arg0, %c0_i32 : i32, i32
  }
}

</mosaic_0001>

<bundles_post_ra>
// kernel: lenet5_forward.1
= control target key start
LH: loop header
LB: loop body
LE: loop exit
PB: predicated region body
PF: predicated region fallthrough
CT: control target
= control target key end

     0   :  { %s4362_s17 = smov 0   ;;  %s5453_s0 = inlined_call_operand.vmem [shape: bf16[2,4,16,32], index: 0, kind: input, shape index: {}]   ;;  %s5454_s1 = inlined_call_operand.vmem [shape: bf16[5,32,256], index: 1, kind: input, shape index: {}]   ;;  %s5455_s2 = inlined_call_operand.vmem [shape: f32[1,128], index: 2, kind: input, shape index: {}]   ;;  %s5456_s3 = inlined_call_operand.vmem [shape: bf16[5,128,256], index: 3, kind: input, shape index: {}]   ;;  %s5457_s4 = inlined_call_operand.vmem [shape: f32[1,128], index: 4, kind: input, shape index: {}]   ;;  %s5458_s5 = inlined_call_operand.vmem [shape: bf16[5,128,128], index: 5, kind: input, shape index: {}]   ;;  %s5459_s6 = inlined_call_operand.vmem [shape: f32[1,128], index: 6, kind: input, shape index: {}]   ;;  %s5460_s7 = inlined_call_operand.vmem [shape: bf16[128,128], index: 7, kind: input, shape index: {}]   ;;  %s5461_s8 = inlined_call_operand.vmem [shape: f32[1,128], index: 8, kind: input, shape index: {}]   ;;  %s5462_s9 = inlined_call_operand.vmem [shape: bf16[128,16], index: 9, kind: input, shape index: {}]   ;;  %s5463_s10 = inlined_call_operand.vmem [shape: f32[1,16], index: 10, kind: input, shape index: {}]   ;;  %s5464_s11 = inlined_call_operand.vmem [shape: f32[16,16], index: 11, kind: output, shape index: {}]  }
   0x1 LB: > { %s3457_s18 = sadd.s32 4294967295, %s4297_s17   ;;  %p3461_p0 = scmp.ge.s32.totalorder %s4297_s17, 1  ;;  %s4297_s17 = sphi %s4362_s17, %s21_s17  }
   0x2   : > { %p337_p1 = scmp.lt.s32.totalorder %s4297_s17, 3 }
   0x4   : > { %p338_p2 = pnand %p3461_p0, %p337_p1 }
   0x6   : > { %341 = sbr.rel (%p338_p2) target bundleno = 1341 (0x53d), region = 64 }
   0xb   : > { %v4373_v0 = vld [vmem:[%s5454_s1 + $0x34] ss:$8 sps:$4 sm:$0xff]   ;;  %p376_p3 = scmp.lt.s32.totalorder %s3457_s18, 1  ;;  %v4378_v1 = vld [vmem:[%s5454_s1 + $0x30] ss:$8 sps:$4 sm:$0xff]   ;;  %v5465_v2 = vmov 0  }
   0xc   : > { %454 = vmatprep.mubr.bf16.mxu1 %v5465_v2  ;;  %1000 = vst [vmem:[#allocation2 + $0x4] sm:$0xf] %v5465_v2  ;;  %1634 = vst [vmem:[#allocation2 + $0xc] sm:$0xf] %v5465_v2  ;;  %747 = vmatprep.mubr.bf16.mxu0 %v5465_v2  ;;  %v4389_v3 = vld [vmem:[%s5454_s1 + $0x24] ss:$8 sps:$4 sm:$0xff]  }
   0xd   : > { %2599 = vst [vmem:[#allocation3 + $0x4] sm:$0xf] %v5465_v2  ;;  %434 = vmatprep.subr.bf16.mxu1 %v4373_v0  ;;  %s5490_s18 = smov (!%p376_p3, %s3457_s18), 1  ;;  %v4397_v4 = vld [vmem:[%s5454_s1 + $0x20] ss:$8 sps:$4 sm:$0xff]   ;;  %vm418_vm0 = vcmask 261120  }
   0xe   : > { %435 = vmatpush1.bf16.msra.mxu1 %v4378_v1  ;;  %s3856_s27 = sshll.u32 %s5490_s18, 5  ;;  %v4404_v5 = vld [vmem:[%s5454_s1 + $0x14] ss:$8 sps:$4 sm:$0xff]   ;;  %v4414_v6 = vld [vmem:[%s5454_s1 + $0x10] ss:$8 sps:$4 sm:$0xff]   ;;  %vm4301_vm1 = vmmov 0  }
   0xf   : > { %436 = vmatprep.subr.bf16.mxu1 %v4389_v3  ;;  %s4409_s13 = scalar_lea.vmem %s5453_s0, %s3856_s27  ;;  %v4422_v8 = vld [vmem:[%s5454_s1 + $0x4] ss:$8 sps:$4 sm:$0xff]   ;;  %v4428_v9 = vld [vmem:[%s5454_s1] ss:$8 sps:$4 sm:$0xff]   ;;  %v4435_v10 = vld [vmem:[%s5454_s1 + $0x94] ss:$8 sps:$4 sm:$0xff]  }
  0x10   : > { %v3465_v7 = vld [vmem:[%s4409_s13 + $0x8] sm:$0xf]  ;;  %v4440_v11 = vld [vmem:[%s5454_s1 + $0x90] ss:$8 sps:$4 sm:$0xff]   ;;  %v4446_v12 = vld [vmem:[%s5454_s1 + $0x54] ss:$8 sps:$4 sm:$0xff]   ;;  %727 = vmatprep.subr.bf16.mxu0 %v4435_v10 }
  0x11   : > { %v386_v13 = vld [vmem:[%s4409_s13] sm:$0xf]  ;;  %v4453_v14 = vld [vmem:[%s5454_s1 + $0x84] ss:$8 sps:$4 sm:$0xff]   ;;  %v4458_v15 = vld [vmem:[%s5454_s1 + $0x50] ss:$8 sps:$4 sm:$0xff]   ;;  %728 = vmatpush1.bf16.msra.mxu0 %v4440_v11 }
  0x12   : > { %437 = vmatpush1.bf16.msra.mxu1 %v4397_v4  ;;  %v4464_v16 = vld [vmem:[%s5454_s1 + $0x80] ss:$8 sps:$4 sm:$0xff]   ;;  %729 = vmatprep.subr.bf16.mxu0 %v4453_v14  ;;  %v4473_v18 = vld [vmem:[%s5454_s1 + $0x44] ss:$8 sps:$4 sm:$0xff]   ;;  %v4488_v23 = vld [vmem:[%s5454_s1 + $0x74] ss:$8 sps:$4 sm:$0xff]  }
  0x13   : > { %498 = vmatprep.subr.bf16.mxu1 %v4404_v5  ;;  %v4101_v17 = vld [vmem:[%s4409_s13] sm:$0x1f]   ;;  %v3480_v25 = vld [vmem:[%s4409_s13 + $0x10] sm:$0xf]  ;;  %v3490_v29 = vld [vmem:[%s4409_s13 + $0x18] sm:$0xf] }
  0x14   : > { %v686_v19 = vshrl.u32 %v4101_v17, 16  ;;  %v688_v20 = vshll.u32 %v4101_v17, 16  ;;  %v4479_v21 = vld [vmem:[%s5454_s1 + $0x40] ss:$8 sps:$4 sm:$0xff]   ;;  %v4496_v26 = vld [vmem:[%s5454_s1 + $0x70] ss:$8 sps:$4 sm:$0xff]  }
  0x15   : > { %3474 = vmatmul.mubr.msk.bf16.vlgmr.msra.gmra.mxu1 %vm418_vm0, %v3465_v7  ;;  %730 = vmatpush1.bf16.msra.mxu0 %v4464_v16  ;;  %v4501_v27 = vld [vmem:[%s5454_s1 + $0x64] ss:$8 sps:$4 sm:$0xff]   ;;  %v4509_v28 = vld [vmem:[%s5454_s1 + $0x60] ss:$8 sps:$4 sm:$0xff]   ;;  %v4105_v33 = vld [vmem:[%s4409_s13 + $0x10] sm:$0x1f]  }
  0x16   : > { %499 = vmatpush1.bf16.msra.mxu1 %v4414_v6  ;;  %518 = vmatprep.mubr.bf16.mxu1 %v5465_v2  ;;  %v690_v22 = vrot.slane %v688_v20, 1  ;;  %v4102_v30 = vld [vmem:[%s4409_s13 + $0x8] sm:$0x1f]   ;;  %v4103_v31 = vld [vmem:[%s4409_s13] sm:$0x1f]   ;;  %v1321_v39 = vshll.u32 %v4105_v33, 16 }
  0x17   : > { %500 = vmatprep.subr.bf16.mxu1 %v4422_v8  ;;  %812 = vmatprep.subr.bf16.mxu0 %v4404_v5  ;;  %v4535_v32 = vld [vmem:[%s4409_s13 + $0x8] sm:$0x1f]   ;;  %v3520_v34 = vld [vmem:[%s4409_s13 + $0x18] sm:$0xf]  ;;  %v937_v35 = vshll.u32 %v4102_v30, 16  ;;  %v1153_v36 = vshll.u32 %v4103_v31, 16 }
  0x18   : > { %v691_v24 = vor.u32 %v690_v22, %v686_v19  ;;  %v4549_v37 = vld [vmem:[%s4409_s13 + $0x18] sm:$0x1f]   ;;  %v1237_v38 = vshll.u32 %v4535_v32, 16  ;;  %v935_v40 = vshrl.u32 %v4102_v30, 16  ;;  %v1151_v42 = vshrl.u32 %v4103_v31, 16  ;;  %s3464_s21 = sshll.u32 %s5490_s18, 3 }
  0x19   : > { %v939_v41 = vrot.slane %v937_v35, 1  ;;  %v1155_v43 = vrot.slane %v1153_v36, 1  ;;  %v1235_v44 = vshrl.u32 %v4535_v32, 16  ;;  %v1319_v46 = vshrl.u32 %v4105_v33, 16  ;;  %v3519_v52 = vld [vmem:[%s4409_s13 + $0x10] sm:$0xf]  ;;  %s384_s26 = scalar_lea.vmem %s5464_s11, %s3464_s21 }
  0x1a   : > { %501 = vmatpush1.bf16.msra.mxu1 %v4428_v9  ;;  %3509 = vmatmul.mubr.msk.bf16.vlgmr.msra.gmra.mxu0 %vm418_vm0, %v691_v24  ;;  %v1239_v45 = vrot.slane %v1237_v38, 1  ;;  %v1323_v47 = vrot.slane %v1321_v39, 1  ;;  %v1570_v48 = vshll.u32 %v4549_v37, 16  ;;  %v1568_v54 = vshrl.u32 %v4549_v37, 16  ;;  %v4626_v57 = vld [vmem:[%s5456_s3 + $0x74] ss:$8 sps:$4 sm:$0xff]  }
  0x1b   : > { %569 = vmatprep.subr.bf16.mxu1 %v4446_v12  ;;  %813 = vmatpush1.bf16.msra.mxu0 %v4414_v6  ;;  %v1156_v49 = vor.u32 %v1155_v43, %v1151_v42  ;;  %v940_v50 = vor.u32 %v939_v41, %v935_v40  ;;  %v4631_v58 = vld [vmem:[%s5456_s3 + $0x70] ss:$8 sps:$4 sm:$0xff]   ;;  %v4638_v59 = vld [vmem:[%s5456_s3 + $0x64] ss:$8 sps:$4 sm:$0xff]   ;;  %v4643_v60 = vld [vmem:[%s5456_s3 + $0x60] ss:$8 sps:$4 sm:$0xff]  }
  0x1c   : > { %814 = vmatprep.subr.bf16.mxu0 %v4422_v8  ;;  %832 = vmatprep.mubr.bf16.mxu0 %v5465_v2  ;;  %v1324_v51 = vor.u32 %v1323_v47, %v1319_v46  ;;  %v1240_v53 = vor.u32 %v1239_v45, %v1235_v44  ;;  %v1572_v55 = vrot.slane %v1570_v48, 1  ;;  %v4650_v61 = vld [vmem:[%s5456_s3 + $0x54] ss:$8 sps:$4 sm:$0xff]   ;;  %v4655_v62 = vld [vmem:[%s5456_s3 + $0x50] ss:$8 sps:$4 sm:$0xff]   ;;  %vm3402_vm2 = vcmask 130048  }
  0x1d   : > { %3479 = vmatmul.mubr.msk.bf16.vlgmr.msra.gmra.mxu1 %vm418_vm0, %v386_v13  ;;  %v4662_v63 = vld [vmem:[%s5456_s3 + $0x44] ss:$8 sps:$4 sm:$0xff]   ;;  %v4739_v13 = vld [vmem:[%s5456_s3 + $0xe0] ss:$8 sps:$4 sm:$0xff]   ;;  %v4776_v19 = vld [vmem:[%s5456_s3 + $0xb4] ss:$8 sps:$4 sm:$0xff]  }
  0x1e   : > { %570 = vmatpush1.bf16.msra.mxu1 %v4458_v15  ;;  %589 = vmatprep.mubr.bf16.mxu1 %v5465_v2  ;;  %v1573_v56 = vor.u32 %v1572_v55, %v1568_v54  ;;  %v4764_v17 = vld [vmem:[%s5456_s3 + $0xc4] ss:$8 sps:$4 sm:$0xff]   ;;  %v4781_v20 = vld [vmem:[%s5456_s3 + $0xb0] ss:$8 sps:$4 sm:$0xff]   ;;  %v4793_v22 = vld [vmem:[%s5456_s3 + $0xa0] ss:$8 sps:$4 sm:$0xff]  }
  0x1f   : > { %571 = vmatprep.subr.bf16.mxu1 %v4473_v18  ;;  %815 = vmatpush1.bf16.msra.mxu0 %v4428_v9 }
  0x20   : > { %896 = vmatprep.subr.bf16.mxu0 %v4488_v23 }
  0x22   : > { %572 = vmatpush1.bf16.msra.mxu1 %v4479_v21  ;;  %3511 = vmatmul.mubr.msk.bf16.vlgmr.msra.gmra.mxu0 %vm418_vm0, %v3465_v7  ;;  %v4703_v7 = vld [vmem:[%s5456_s3 + $0x10] ss:$8 sps:$4 sm:$0xff]  }
  0x23   : > { %642 = vmatprep.subr.bf16.mxu1 %v4488_v23  ;;  %897 = vmatpush1.bf16.msra.mxu0 %v4496_v26  ;;  %5477 = vst [vmem:[#allocation7_spill] sm:$0xff] %v4703_v7 }
  0x24   : > { %898 = vmatprep.subr.bf16.mxu0 %v4501_v27  ;;  %916 = vmatprep.mubr.bf16.mxu0 %v5465_v2 }
  0x25   : > { %3489 = vmatmul.mubr.msk.bf16.vlgmr.msra.gmra.mxu1 %vm418_vm0, %v3480_v25 }
  0x26   : > { %643 = vmatpush1.bf16.msra.mxu1 %v4496_v26  ;;  %662 = vmatprep.mubr.bf16.mxu1 %v5465_v2 }
  0x27   : > { %644 = vmatprep.subr.bf16.mxu1 %v4501_v27  ;;  %899 = vmatpush1.bf16.msra.mxu0 %v4509_v28 }
  0x28   : > { %1046 = vmatprep.subr.bf16.mxu0 %v4373_v0 }
  0x2a   : > { %645 = vmatpush1.bf16.msra.mxu1 %v4509_v28  ;;  %3513 = vmatmul.mubr.msk.bf16.vlgmr.msra.gmra.mxu0 %vm418_vm0, %v691_v24  ;;  %v4805_v24 = vld [vmem:[%s5456_s3 + $0x90] ss:$8 sps:$4 sm:$0xff]  }
  0x2b   : > { %771 = vmatprep.subr.bf16.mxu1 %v4373_v0  ;;  %1047 = vmatpush1.bf16.msra.mxu0 %v4378_v1 }
  0x2c   : > { %1048 = vmatprep.subr.bf16.mxu0 %v4389_v3  ;;  %1066 = vmatprep.mubr.bf16.mxu0 %v5465_v2 }
  0x2d   : > { %3499 = vmatmul.mubr.msk.bf16.vlgmr.msra.gmra.mxu1 %vm418_vm0, %v3490_v29 }
  0x2e   : > { %772 = vmatpush1.bf16.msra.mxu1 %v4378_v1  ;;  %791 = vmatprep.mubr.bf16.mxu1 %v5465_v2 }
  0x2f   : > { %773 = vmatprep.subr.bf16.mxu1 %v4389_v3  ;;  %1049 = vmatpush1.bf16.msra.mxu0 %v4397_v4 }
  0x30   : > { %1192 = vmatprep.subr.bf16.mxu0 %v4446_v12 }
  0x32   : > { %774 = vmatpush1.bf16.msra.mxu1 %v4397_v4  ;;  %3529 = vmatmul.mubr.msk.bf16.vlgmr.msra.gmra.mxu0 %vm418_vm0, %v3520_v34 }
  0x33   : > { %853 = vmatprep.subr.bf16.mxu1 %v4446_v12  ;;  %1193 = vmatpush1.bf16.msra.mxu0 %v4458_v15 }
  0x34   : > { %1194 = vmatprep.subr.bf16.mxu0 %v4473_v18  ;;  %1212 = vmatprep.mubr.bf16.mxu0 %v5465_v2 }
  0x35   : > { %3510 = vmatmul.mubr.msk.bf16.vlgmr.msra.gmra.mxu1 %vm418_vm0, %v3480_v25  ;;  %v4812_v25 = vld [vmem:[%s5456_s3 + $0x80] ss:$8 sps:$4 sm:$0xff]  }
  0x36   : > { %854 = vmatpush1.bf16.msra.mxu1 %v4458_v15  ;;  %873 = vmatprep.mubr.bf16.mxu1 %v5465_v2 }
  0x37   : > { %855 = vmatprep.subr.bf16.mxu1 %v4473_v18  ;;  %1195 = vmatpush1.bf16.msra.mxu0 %v4479_v21 }
  0x38   : > { %1360 = vmatprep.subr.bf16.mxu0 %v4435_v10 }
  0x3a   : > { %856 = vmatpush1.bf16.msra.mxu1 %v4479_v21  ;;  %3544 = vmatmul.mubr.msk.bf16.vlgmr.msra.gmra.mxu0 %vm418_vm0, %v1156_v49 }
  0x3b   : > { %956 = vmatprep.subr.bf16.mxu1 %v4435_v10  ;;  %1361 = vmatpush1.bf16.msra.mxu0 %v4440_v11 }
  0x3c   : > { %1362 = vmatprep.subr.bf16.mxu0 %v4453_v14  ;;  %1380 = vmatprep.mubr.bf16.mxu0 %v5465_v2 }
  0x3d   : > { %3512 = vmatmul.mubr.msk.bf16.vlgmr.msra.gmra.mxu1 %vm418_vm0, %v3490_v29 }
  0x3e   : > { %957 = vmatpush1.bf16.msra.mxu1 %v4440_v11  ;;  %976 = vmatprep.mubr.bf16.mxu1 %v5465_v2 }
  0x3f   : > { %958 = vmatprep.subr.bf16.mxu1 %v4453_v14  ;;  %1363 = vmatpush1.bf16.msra.mxu0 %v4464_v16 }
  0x40   : > { %1445 = vmatprep.subr.bf16.mxu0 %v4404_v5 }
  0x42   : > { %959 = vmatpush1.bf16.msra.mxu1 %v4464_v16  ;;  %3568 = vmatmul.mubr.msk.bf16.vlgmr.msra.gmra.mxu0 %vm418_vm0, %v1324_v51 }
  0x43   : > { %1110 = vmatprep.subr.bf16.mxu1 %v4404_v5  ;;  %1446 = vmatpush1.bf16.msra.mxu0 %v4414_v6  ;;  %v4691_v5 = vld [vmem:[%s5456_s3 + $0x20] ss:$8 sps:$4 sm:$0xff]  }
  0x44   : > { %1447 = vmatprep.subr.bf16.mxu0 %v4422_v8  ;;  %1465 = vmatprep.mubr.bf16.mxu0 %v5465_v2  ;;  %5475 = vst [vmem:[#allocation5_spill] sm:$0xff] %v4691_v5 }
  0x45   : > { %3517 = vmatmul.mubr.msk.bf16.vlgmr.msra.gmra.mxu1 %vm418_vm0, %v940_v50 }
  0x46   : > { %1111 = vmatpush1.bf16.msra.mxu1 %v4414_v6  ;;  %1130 = vmatprep.mubr.bf16.mxu1 %v5465_v2  ;;  %v4698_v6 = vld [vmem:[%s5456_s3 + $0x14] ss:$8 sps:$4 sm:$0xff]  }
  0x47   : > { %1112 = vmatprep.subr.bf16.mxu1 %v4422_v8  ;;  %1448 = vmatpush1.bf16.msra.mxu0 %v4428_v9  ;;  %5476 = vst [vmem:[#allocation6_spill] sm:$0xff] %v4698_v6  ;;  %v4710_v8 = vld [vmem:[%s5456_s3 + $0x4] ss:$8 sps:$4 sm:$0xff]  }
  0x48   : > { %1529 = vmatprep.subr.bf16.mxu0 %v4488_v23  ;;  %5478 = vst [vmem:[#allocation8_spill] sm:$0xff] %v4710_v8 }
  0x4a   : > { %1113 = vmatpush1.bf16.msra.mxu1 %v4428_v9  ;;  %3570 = vmatmul.mubr.msk.bf16.vlgmr.msra.gmra.mxu0 %vm418_vm0, %v3520_v34  ;;  %v4715_v9 = vld [vmem:[%s5456_s3] ss:$8 sps:$4 sm:$0xff]  }
  0x4b   : > { %1276 = vmatprep.subr.bf16.mxu1 %v4488_v23  ;;  %1530 = vmatpush1.bf16.msra.mxu0 %v4496_v26  ;;  %5479 = vst [vmem:[#allocation9_spill] sm:$0xff] %v4715_v9  ;;  %v4800_v23 = vld [vmem:[%s5456_s3 + $0x94] ss:$8 sps:$4 sm:$0xff]  }
  0x4c   : > { %1531 = vmatprep.subr.bf16.mxu0 %v4501_v27  ;;  %1549 = vmatprep.mubr.bf16.mxu0 %v5465_v2 }
  0x4d   : > { %3534 = vmatmul.mubr.msk.bf16.vlgmr.msra.gmra.mxu1 %vm418_vm0, %v3519_v52 }
  0x4e   : > { %1277 = vmatpush1.bf16.msra.mxu1 %v4496_v26  ;;  %1296 = vmatprep.mubr.bf16.mxu1 %v5465_v2  ;;  %v4817_v26 = vld [vmem:[%s5456_s3 + $0x84] ss:$8 sps:$4 sm:$0xff]  }
  0x4f   : > { %1278 = vmatprep.subr.bf16.mxu1 %v4501_v27  ;;  %1532 = vmatpush1.bf16.msra.mxu0 %v4509_v28  ;;  %v4822_v27 = vld [vmem:[%s5456_s3 + $0x174] ss:$8 sps:$4 sm:$0xff]  }
  0x52   : > { %1279 = vmatpush1.bf16.msra.mxu1 %v4509_v28  ;;  %3572 = vmatmul.mubr.msk.bf16.vlgmr.msra.gmra.mxu0 %vm418_vm0, %v1324_v51 }
  0x53   : > { %1404 = vmatprep.subr.bf16.mxu1 %v4373_v0  ;;  %1782 = vmatprep.mubr.bf16.mxu0 %v5465_v2  ;;  %v4667_v0 = vld [vmem:[%s5456_s3 + $0x40] ss:$8 sps:$4 sm:$0xff]  }
  0x55   : > { %3556 = vmatmul.mubr.msk.bf16.vlgmr.msra.gmra.mxu1 %vm418_vm0, %v1240_v53 }
  0x56   : > { %1405 = vmatpush1.bf16.msra.mxu1 %v4378_v1  ;;  %1424 = vmatprep.mubr.bf16.mxu1 %v5465_v2  ;;  %v4674_v1 = vld [vmem:[%s5456_s3 + $0x34] ss:$8 sps:$4 sm:$0xff]  }
  0x57   : > { %1406 = vmatprep.subr.bf16.mxu1 %v4389_v3  ;;  %v4679_v3 = vld [vmem:[%s5456_s3 + $0x30] ss:$8 sps:$4 sm:$0xff]  }
  0x5a   : > { %1407 = vmatpush1.bf16.msra.mxu1 %v4397_v4  ;;  %v4686_v4 = vld [vmem:[%s5456_s3 + $0x24] ss:$8 sps:$4 sm:$0xff]  }
  0x5b   : > { %1486 = vmatprep.subr.bf16.mxu1 %v4446_v12  ;;  %5474 = vst [vmem:[#allocation4_spill] sm:$0xff] %v4686_v4  ;;  %v4734_v12 = vld [vmem:[%s5456_s3 + $0xe4] ss:$8 sps:$4 sm:$0xff]  }
  0x5d   : > { %3569 = vmatmul.mubr.msk.bf16.vlgmr.msra.gmra.mxu1 %vm418_vm0, %v1156_v49 }
  0x5e   : > { %1487 = vmatpush1.bf16.msra.mxu1 %v4458_v15  ;;  %1506 = vmatprep.mubr.bf16.mxu1 %v5465_v2  ;;  %v4751_v15 = vld [vmem:[%s5456_s3 + $0x1f4] ss:$8 sps:$4 sm:$0xff]  }
  0x5f   : > { %1488 = vmatprep.subr.bf16.mxu1 %v4473_v18  ;;  %5480 = vst [vmem:[#allocation10_spill] sm:$0xff] %v4751_v15  ;;  %v4769_v18 = vld [vmem:[%s5456_s3 + $0xc0] ss:$8 sps:$4 sm:$0xff]  }
  0x62   : > { %1489 = vmatpush1.bf16.msra.mxu1 %v4479_v21  ;;  %v4788_v21 = vld [vmem:[%s5456_s3 + $0xa4] ss:$8 sps:$4 sm:$0xff]  }
  0x63   : > { %1589 = vmatprep.subr.bf16.mxu1 %v4435_v10  ;;  %v4722_v10 = vld [vmem:[%s5456_s3 + $0xf4] ss:$8 sps:$4 sm:$0xff]  }
  0x64   : > { %1750 = vmatprep.subr.bf16.mxu0 %v4722_v10 }
  0x65   : > { %3571 = vmatmul.mubr.msk.bf16.vlgmr.msra.gmra.mxu1 %vm418_vm0, %v1240_v53 }
  0x66   : > { %1590 = vmatpush1.bf16.msra.mxu1 %v4440_v11  ;;  %1609 = vmatprep.mubr.bf16.mxu1 %v5465_v2  ;;  %v4727_v11 = vld [vmem:[%s5456_s3 + $0xf0] ss:$8 sps:$4 sm:$0xff]  }
  0x67   : > { %1591 = vmatprep.subr.bf16.mxu1 %v4453_v14  ;;  %1751 = vmatpush1.bf16.msra.mxu0 %v4727_v11  ;;  %v4746_v14 = vld [vmem:[%s5456_s3 + $0xd4] ss:$8 sps:$4 sm:$0xff]  }
  0x68   : > { %1752 = vmatprep.subr.bf16.mxu0 %v4734_v12 }
  0x6a   : > { %1592 = vmatpush1.bf16.msra.mxu1 %v4464_v16  ;;  %v4756_v16 = vld [vmem:[%s5456_s3 + $0xd0] ss:$8 sps:$4 sm:$0xff]  }
  0x6b   : > { %1871 = vmatprep.subr.bf16.mxu1 %v4626_v57  ;;  %1753 = vmatpush1.bf16.msra.mxu0 %v4739_v13 }
  0x6c   : > { %1754 = vmatprep.subr.bf16.mxu0 %v4746_v14 }
  0x6d   : > { %3576 = vmatmul.mubr.msk.bf16.vlgmr.msra.gmra.mxu1 %vm418_vm0, %v1573_v56 }
  0x6e   : > { %1903 = vmatprep.mubr.bf16.mxu1 %v5465_v2  ;;  %1872 = vmatpush1.bf16.msra.mxu1 %v4631_v58 }
  0x6f   : > { %1873 = vmatprep.subr.bf16.mxu1 %v4638_v59  ;;  %1755 = vmatpush1.bf16.msra.mxu0 %v4756_v16 }
  0x70   : > { %1756 = vmatprep.subr.bf16.mxu0 %v4764_v17 }
  0x72   : > { %1874 = vmatpush1.bf16.msra.mxu1 %v4643_v60 }
  0x73   : > { %1875 = vmatprep.subr.bf16.mxu1 %v4650_v61  ;;  %1757 = vmatpush1.bf16.msra.mxu0 %v4769_v18 }
  0x74   : > { %1758 = vmatprep.subr.bf16.mxu0 %v4776_v19 }
  0x76   : > { %1876 = vmatpush1.bf16.msra.mxu1 %v4655_v62 }
  0x77   : > { %1877 = vmatprep.subr.bf16.mxu1 %v4662_v63  ;;  %1759 = vmatpush1.bf16.msra.mxu0 %v4781_v20 }
  0x78   : > { %1760 = vmatprep.subr.bf16.mxu0 %v4788_v21 }
  0x7a   : > { %1878 = vmatpush1.bf16.msra.mxu1 %v4667_v0 }
  0x7b   : > { %1879 = vmatprep.subr.bf16.mxu1 %v4674_v1  ;;  %1761 = vmatpush1.bf16.msra.mxu0 %v4793_v22 }
  0x7c   : > { %1762 = vmatprep.subr.bf16.mxu0 %v4800_v23 }
  0x7e   : > { %1880 = vmatpush1.bf16.msra.mxu1 %v4679_v3 }
  0x7f   : > { %1881 = vmatprep.subr.bf16.mxu1 %v4686_v4  ;;  %1763 = vmatpush1.bf16.msra.mxu0 %v4805_v24 }
  0x80   : > { %1764 = vmatprep.subr.bf16.mxu0 %v4817_v26 }
  0x82   : > { %1882 = vmatpush1.bf16.msra.mxu1 %v4691_v5 }
  0x83   : > { %1883 = vmatprep.subr.bf16.mxu1 %v4698_v6  ;;  %1765 = vmatpush1.bf16.msra.mxu0 %v4812_v25 }
  0x84   : > { %2024 = vmatprep.subr.bf16.mxu0 %v4822_v27 }
  0x86   : > { %1884 = vmatpush1.bf16.msra.mxu1 %v4703_v7 }
  0x87   : > { %1885 = vmatprep.subr.bf16.mxu1 %v4710_v8 }
  0x8a   : > { %1886 = vmatpush1.bf16.msra.mxu1 %v4715_v9 }
  0x8b   : > { %2179 = vmatprep.subr.bf16.mxu1 %v4751_v15 }
  0xd5   : > { %v456_v28 = vpop.f32.mrf.mxu1 }
  0xd7   : > { %v458_v29 = vpop.f32.mrf.mxu1 }
  0xd9   : > { %v460_v30 = vpop.f32.mrf.mxu1 }
  0xda   : > { %v749_v35 = vpop.f32.mrf.mxu0 }
  0xdb   : > { %v461_v31 = vpop.f32.mrf.mxu1 }
  0xdc   : > { %v751_v37 = vpop.f32.mrf.mxu0 }
  0xdd   : > { %v520_v32 = vpop.f32.mrf.mxu1 }
  0xde   : > { %v753_v39 = vpop.f32.mrf.mxu0  ;;  %v521_v2 = vadd.f32 %v520_v32, %v456_v28 }
  0xdf   : > { %v522_v33 = vpop.f32.mrf.mxu1 }
  0xe0   : > { %v754_v41 = vpop.f32.mrf.mxu0 }
  0xe1   : > { %v524_v34 = vpop.f32.mrf.mxu1 }
  0xe2   : > { %v834_v43 = vpop.f32.mrf.mxu0 }
  0xe3   : > { %v525_v36 = vpop.f32.mrf.mxu1 }
  0xe4   : > { %v836_v45 = vpop.f32.mrf.mxu0 }
  0xe5   : > { %v591_v38 = vpop.f32.mrf.mxu1 }
  0xe6   : > { %v838_v47 = vpop.f32.mrf.mxu0  ;;  %v598_v8 = vadd.f32 %v591_v38, %v521_v2 }
  0xe7   : > { %v593_v40 = vpop.f32.mrf.mxu1 }
  0xe8   : > { %v839_v49 = vpop.f32.mrf.mxu0 }
  0xe9   : > { %v595_v42 = vpop.f32.mrf.mxu1 }
  0xea   : > { %v918_v51 = vpop.f32.mrf.mxu0  ;;  %v523_v42 = vadd.f32 %v522_v33, %v458_v29 }
  0xeb   : > { %v596_v44 = vpop.f32.mrf.mxu1 }
  0xec   : > { %v920_v53 = vpop.f32.mrf.mxu0  ;;  %v599_v49 = vadd.f32 %v593_v40, %v523_v42 }
  0xed   : > { %v664_v46 = vpop.f32.mrf.mxu1 }
  0xee   : > { %v922_v55 = vpop.f32.mrf.mxu0 }
  0xef   : > { %v666_v48 = vpop.f32.mrf.mxu1 }
  0xf0   : > { %v923_v30 = vpop.f32.mrf.mxu0  ;;  %v672_v55 = vadd.f32 %v666_v48, %v599_v49 }
  0xf1   : > { %v668_v50 = vpop.f32.mrf.mxu1 }
  0xf2   : > { %v4827_v34 = vpop.f32.mrf.mxu0  ;;  %v757_v29 = vadd.f32 %v751_v37, %v672_v55 }
  0xf3   : > { %v669_v52 = vpop.f32.mrf.mxu1 }
  0xf4   : > { %v4829_v39 = vpop.f32.mrf.mxu0 }
  0xf5   : > { %v793_v54 = vpop.f32.mrf.mxu1 }
  0xf6   : > { %v1072_v44 = vpop.f32.mrf.mxu0  ;;  %v835_v50 = vadd.f32 %v834_v43, %v793_v54 }
  0xf7   : > { %v795_v56 = vpop.f32.mrf.mxu1 }
  0xf8   : > { %v837_v15 = vadd.f32 %v836_v45, %v795_v56  ;;  %v1073_v52 = vpop.f32.mrf.mxu0 }
  0xf9   : > { %v797_v31 = vpop.f32.mrf.mxu1 }
  0xfa   : > { %v4831_v31 = vpop.f32.mrf.mxu0 }
  0xfb   : > { %v798_v36 = vpop.f32.mrf.mxu1 }
  0xfc   : > { %v671_v36 = vadd.f32 %v664_v46, %v598_v8  ;;  %v4833_v5 = vpop.f32.mrf.mxu0 }
  0xfd   : > { %v875_v41 = vpop.f32.mrf.mxu1 }
  0xfe   : > { %v882_v7 = vadd.f32 %v875_v41, %v835_v50  ;;  %v1218_v28 = vpop.f32.mrf.mxu0  ;;  %v756_v40 = vadd.f32 %v749_v35, %v671_v36 }
  0xff   : > { %v877_v47 = vpop.f32.mrf.mxu1 }
 0x100   : > { %v883_v30 = vadd.f32 %v877_v47, %v837_v15  ;;  %v925_v33 = vadd.f32 %v918_v51, %v882_v7  ;;  %v758_v38 = vmax.f32 %v756_v40, %v757_v29  ;;  %v4848_v29 = vld [vmem:[%s5456_s3 + $0x1f0] ss:$8 sps:$4 sm:$0xff]  }
 0x101   : > { %v879_v9 = vpop.f32.mrf.mxu1 }
 0x102   : > { %v926_v44 = vadd.f32 %v920_v53, %v883_v30  ;;  %v1219_v9 = vpop.f32.mrf.mxu0 }
 0x103   : > { %v880_v6 = vpop.f32.mrf.mxu1  ;;  %v5481_v9 = vmov 0  }
 0x104   : > { %v4835_v15 = vpop.f32.mrf.mxu0  ;;  %v4840_v6 = vld [vmem:[%s5455_s2] ss:$0 sm:$0xff] }
 0x105   : > { %v978_v4 = vpop.f32.mrf.mxu1 }
 0x106   : > { %v985_v43 = vadd.f32 %v978_v4, %v925_v33  ;;  %v4842_v7 = vpop.f32.mrf.mxu0 }
 0x107   : > { %v980_v32 = vpop.f32.mrf.mxu1 }
 0x108   : > { %v986_v45 = vadd.f32 %v980_v32, %v926_v44  ;;  %v1386_v4 = vpop.f32.mrf.mxu0  ;;  %v4853_v44 = vld [vmem:[%s5456_s3 + $0x1e4] ss:$8 sps:$4 sm:$0xff]  }
 0x109   : > { %v982_v2 = vpop.f32.mrf.mxu1  ;;  %v4878_v4 = vld [vmem:[%s5456_s3 + $0x1c4] ss:$8 sps:$4 sm:$0xff]  }
 0x10a   : > { %v987_v48 = vmax.f32 %v985_v43, %v986_v45  ;;  %v1387_v54 = vpop.f32.mrf.mxu0  ;;  %v4859_v45 = vld [vmem:[%s5456_s3 + $0x1e0] ss:$8 sps:$4 sm:$0xff]  }
 0x10b   : > { %v983_v8 = vpop.f32.mrf.mxu1 }
 0x10c   : > { %v988_v37 = vmax.f32 %v758_v38, %v987_v48  ;;  %v1467_v42 = vpop.f32.mrf.mxu0  ;;  %v4866_v38 = vld [vmem:[%s5456_s3 + $0x1d4] ss:$8 sps:$4 sm:$0xff]  }
 0x10d   : > { %v1132_v46 = vpop.f32.mrf.mxu1 }
 0x10e   : > { %v996_v35 = vadd.f32 %v4840_v6, %v988_v37  ;;  %v1469_v49 = vpop.f32.mrf.mxu0 }
 0x10f   : > { %v1134_v51 = vpop.f32.mrf.mxu1 }
 0x110   : > { %v997_v53 = vmax.f32 %v996_v35, 0.0  ;;  %v1471_v52 = vpop.f32.mrf.mxu0  ;;  %v4872_v35 = vld [vmem:[%s5456_s3 + $0x1d0] ss:$8 sps:$4 sm:$0xff]   ;;  %v1135_v54 = vadd.f32 %v1134_v51, %v4829_v39 }
 0x111   : > { %v1136_v56 = vpop.f32.mrf.mxu1  ;;  %v4892_v52 = vld [vmem:[%s5456_s3 + $0x1b4] ss:$8 sps:$4 sm:$0xff]  }
 0x112   : > { %v998_v41 = vpack.c.bf16 %v997_v53, %v997_v53  ;;  %v1472_v30 = vpop.f32.mrf.mxu0  ;;  %v1222_v39 = vadd.f32 %v4833_v5, %v1135_v54  ;;  %v4906_v5 = vld [vmem:[%s5456_s3 + $0x1a4] ss:$8 sps:$4 sm:$0xff]  }
 0x113   : > { %v1137_v47 = vpop.f32.mrf.mxu1 }
 0x114   : > { %999 = vst [vmem:[#allocation2] sm:$0xf] %v998_v41  ;;  %v1551_v33 = vpop.f32.mrf.mxu0  ;;  %v4885_v41 = vld [vmem:[%s5456_s3 + $0x1c0] ss:$8 sps:$4 sm:$0xff]   ;;  %v1133_v47 = vadd.f32 %v1132_v46, %v4827_v34 }
 0x115   : > { %v1298_v50 = vpop.f32.mrf.mxu1 }
 0x116   : > { %v1553_v40 = vpop.f32.mrf.mxu0  ;;  %v1221_v34 = vadd.f32 %v4831_v31, %v1133_v47 }
 0x117   : > { %v1300_v55 = vpop.f32.mrf.mxu1 }
 0x118   : > { %v1555_v2 = vpop.f32.mrf.mxu0  ;;  %v1306_v46 = vadd.f32 %v1300_v55, %v1222_v39  ;;  %v4932_v39 = vld [vmem:[%s5456_s3 + $0x184] ss:$8 sps:$4 sm:$0xff]  }
 0x119   : > { %v1302_v36 = vpop.f32.mrf.mxu1 }
 0x11a   : > { %v1556_v8 = vpop.f32.mrf.mxu0  ;;  %v1390_v31 = vadd.f32 %v4842_v7, %v1306_v46  ;;  %v4926_v7 = vld [vmem:[%s5456_s3 + $0x190] ss:$8 sps:$4 sm:$0xff]  }
 0x11b   : > { %v1303_v28 = vpop.f32.mrf.mxu1  ;;  %v1635_v32 = vld [vmem:[#allocation2] sm:$0xf] }
 0x11c   : > { %1904 = vmatmul.mubr.bf16.vlgmr.msra.gmra.mxu1 %v1635_v32  ;;  %v4899_v32 = vld [vmem:[%s5456_s3 + $0x1b0] ss:$8 sps:$4 sm:$0xff]  }
 0x11d   : > { %v1426_v43 = vpop.f32.mrf.mxu1  ;;  %2180 = vmatpush1.bf16.msra.mxu1 %v4848_v29  ;;  %2211 = vmatprep.mubr.bf16.mxu1 %v5481_v9 }
 0x11e   : > { %2181 = vmatprep.subr.bf16.mxu1 %v4853_v44  ;;  %v1468_v51 = vadd.f32 %v1467_v42, %v1426_v43 }
 0x11f   : > { %v1428_v48 = vpop.f32.mrf.mxu1 }
 0x120   : > { %v1470_v36 = vadd.f32 %v1469_v49, %v1428_v48  ;;  %v1305_v49 = vadd.f32 %v1298_v50, %v1221_v34  ;;  %v4912_v48 = vld [vmem:[%s5456_s3 + $0x1a0] ss:$8 sps:$4 sm:$0xff]  }
 0x121   : > { %v1430_v37 = vpop.f32.mrf.mxu1  ;;  %2182 = vmatpush1.bf16.msra.mxu1 %v4859_v45 }
 0x122   : > { %2183 = vmatprep.subr.bf16.mxu1 %v4866_v38  ;;  %v1389_v54 = vadd.f32 %v4835_v15, %v1305_v49 }
 0x123   : > { %v1431_v53 = vpop.f32.mrf.mxu1 }
 0x124   : > { %v4919_v53 = vld [vmem:[%s5456_s3 + $0x194] ss:$8 sps:$4 sm:$0xff]  }
 0x125   : > { %v1508_v56 = vpop.f32.mrf.mxu1  ;;  %2184 = vmatpush1.bf16.msra.mxu1 %v4872_v35 }
 0x126   : > { %2185 = vmatprep.subr.bf16.mxu1 %v4878_v4  ;;  %v1515_v2 = vadd.f32 %v1508_v56, %v1468_v51 }
 0x127   : > { %v1510_v30 = vpop.f32.mrf.mxu1 }
 0x128   : > { %v1516_v8 = vadd.f32 %v1510_v30, %v1470_v36  ;;  %v1558_v55 = vadd.f32 %v1551_v33, %v1515_v2  ;;  %v1391_v33 = vmax.f32 %v1389_v54, %v1390_v31  ;;  %v4938_v36 = vld [vmem:[%s5456_s3 + $0x180] ss:$8 sps:$4 sm:$0xff]   ;;  %v4947_v2 = vld [vmem:[%s5456_s3 + $0x170] ss:$8 sps:$4 sm:$0xff]   ;;  %v4971_v31 = vld [vmem:[%s5456_s3 + $0x154] ss:$8 sps:$4 sm:$0xff]  }
 0x129   : > { %v1512_v28 = vpop.f32.mrf.mxu1  ;;  %2186 = vmatpush1.bf16.msra.mxu1 %v4885_v41  ;;  %v4977_v54 = vld [vmem:[%s5456_s3 + $0x150] ss:$8 sps:$4 sm:$0xff]  }
 0x12a   : > { %2187 = vmatprep.subr.bf16.mxu1 %v4892_v52  ;;  %v1559_v37 = vadd.f32 %v1553_v40, %v1516_v8  ;;  %v4949_v8 = vld [vmem:[#allocation2 + $0xc] sm:$0x1] }
 0x12b   : > { %v1513_v42 = vpop.f32.mrf.mxu1 }
 0x12d   : > { %v1611_v43 = vpop.f32.mrf.mxu1  ;;  %2188 = vmatpush1.bf16.msra.mxu1 %v4899_v32 }
 0x12e   : > { %2189 = vmatprep.subr.bf16.mxu1 %v4906_v5  ;;  %v1618_v56 = vadd.f32 %v1611_v43, %v1558_v55  ;;  %v4964_v43 = vld [vmem:[%s5456_s3 + $0x160] ss:$8 sps:$4 sm:$0xff]  }
 0x12f   : > { %v1613_v50 = vpop.f32.mrf.mxu1 }
 0x130   : > { %v1619_v47 = vadd.f32 %v1613_v50, %v1559_v37 }
 0x131   : > { %v1615_v30 = vpop.f32.mrf.mxu1  ;;  %2190 = vmatpush1.bf16.msra.mxu1 %v4912_v48 }
 0x132   : > { %v1620_v40 = vmax.f32 %v1618_v56, %v1619_v47  ;;  %2191 = vmatprep.subr.bf16.mxu1 %v4919_v53  ;;  %v4985_v47 = vld [vmem:[%s5456_s3 + $0x144] ss:$8 sps:$4 sm:$0xff]   ;;  %v4993_v30 = vld [vmem:[%s5456_s3 + $0x140] ss:$8 sps:$4 sm:$0xff]  }
 0x133   : > { %v1616_v15 = vpop.f32.mrf.mxu1 }
 0x134   : > { %v1621_v51 = vmax.f32 %v1391_v33, %v1620_v40  ;;  %v5000_v33 = vld [vmem:[%s5456_s3 + $0x134] ss:$8 sps:$4 sm:$0xff]   ;;  %v1912_v40 = vld [vmem:[#allocation2] sm:$0xf]  ;;  %v5017_v15 = vld [vmem:[#allocation2 + $0x4] sm:$0x1] }
 0x135   : > { %2192 = vmatpush1.bf16.msra.mxu1 %v4926_v7 }
 0x136   : > { %v1629_v28 = vadd.f32 %v4840_v6, %v1621_v51  ;;  %2193 = vmatprep.subr.bf16.mxu1 %v4932_v39  ;;  %v4954_v6 = vld [vmem:[%s5456_s3 + $0x164] ss:$8 sps:$4 sm:$0xff]   ;;  %v3642_v51 = vcombine.low %v1912_v40, %v5017_v15 }
 0x138   : > { %v1630_v34 = vmax.f32 %v1629_v28, 0.0  ;;  %v1939_v28 = vshll.u32 %v3642_v51, 16 }
 0x139   : > { %2194 = vmatpush1.bf16.msra.mxu1 %v4938_v36 }
 0x13a   : > { %v1631_v46 = vpack.c.bf16 %v1630_v34, %v1630_v34  ;;  %2369 = vmatprep.subr.bf16.mxu1 %v4722_v10  ;;  %v5060_v34 = vld [vmem:[%s5456_s3 + $0x274] ss:$8 sps:$4 sm:$0xff]  }
 0x13c   : > { %1633 = vst [vmem:[#allocation2 + $0x8] sm:$0xf] %v1631_v46  ;;  %v1937_v46 = vshrl.u32 %v3642_v51, 16  ;;  %v4243_v51 = vld [vmem:[%s5458_s5 + $0x50] sm:$0xff]  }
 0x143   : > { %v4956_v42 = vld [vmem:[#allocation2 + $0x8] sm:$0xf] }
 0x144   : > { %v2067_v49 = vld [vmem:[#allocation2 + $0x8] sm:$0xf]  ;;  %1783 = vmatmul.mubr.bf16.vlgmr.msra.gmra.mxu0 %v4956_v42 }
 0x145   : > { %v3675_v10 = vcombine.low %v2067_v49, %v4949_v8  ;;  %2025 = vmatpush1.bf16.msra.mxu0 %v4947_v2  ;;  %2056 = vmatprep.mubr.bf16.mxu0 %v5481_v9 }
 0x146   : > { %2026 = vmatprep.subr.bf16.mxu0 %v4954_v6 }
 0x147   : > { %v2094_v55 = vshll.u32 %v3675_v10, 16  ;;  %v2092_v37 = vshrl.u32 %v3675_v10, 16  ;;  %v4219_v10 = vld [vmem:[%s5456_s3 + $0x234] ss:$8 sps:$4 sm:$0xff]  }
 0x149   : > { %v2096_v50 = vrot.slane %v2094_v55, 1  ;;  %2027 = vmatpush1.bf16.msra.mxu0 %v4964_v43  ;;  %v4228_v55 = vld [vmem:[%s5456_s3 + $0x204] ss:$8 sps:$4 sm:$0xff]  }
 0x14a   : > { %2028 = vmatprep.subr.bf16.mxu0 %v4971_v31 }
 0x14b   : > { %v4980_v56 = vor.u32 %v2096_v50, %v2092_v37  ;;  %v2222_v37 = vld [vmem:[#allocation2] sm:$0xe] }
 0x14c   : > { %v4226_v50 = vld [vmem:[%s5456_s3 + $0x200] ss:$8 sps:$4 sm:$0xff]  }
 0x14d   : > { %2212 = vmatmul.mubr.bf16.vlgmr.msra.gmra.mxu1 %v4980_v56  ;;  %2029 = vmatpush1.bf16.msra.mxu0 %v4977_v54 }
 0x14e   : > { %2370 = vmatpush1.bf16.msra.mxu1 %v4727_v11  ;;  %2030 = vmatprep.subr.bf16.mxu0 %v4985_v47  ;;  %v5008_v11 = vld [vmem:[%s5456_s3 + $0x130] ss:$8 sps:$4 sm:$0xff]  }
 0x14f   : > { %2371 = vmatprep.subr.bf16.mxu1 %v4734_v12  ;;  %2401 = vmatprep.mubr.bf16.mxu1 %v5481_v9  ;;  %v5015_v12 = vld [vmem:[%s5456_s3 + $0x124] ss:$8 sps:$4 sm:$0xff]  }
 0x151   : > { %2031 = vmatpush1.bf16.msra.mxu0 %v4993_v30 }
 0x152   : > { %2372 = vmatpush1.bf16.msra.mxu1 %v4739_v13  ;;  %2032 = vmatprep.subr.bf16.mxu0 %v5000_v33  ;;  %v5024_v13 = vld [vmem:[%s5456_s3 + $0x120] ss:$8 sps:$4 sm:$0xff]  }
 0x153   : > { %2373 = vmatprep.subr.bf16.mxu1 %v4746_v14  ;;  %v5031_v14 = vld [vmem:[%s5456_s3 + $0x114] ss:$8 sps:$4 sm:$0xff]  }
 0x155   : > { %2033 = vmatpush1.bf16.msra.mxu0 %v5008_v11 }
 0x156   : > { %2374 = vmatpush1.bf16.msra.mxu1 %v4756_v16  ;;  %2034 = vmatprep.subr.bf16.mxu0 %v5015_v12  ;;  %v5039_v16 = vld [vmem:[%s5456_s3 + $0x110] ss:$8 sps:$4 sm:$0xff]  }
 0x157   : > { %2375 = vmatprep.subr.bf16.mxu1 %v4764_v17  ;;  %v5046_v17 = vld [vmem:[%s5456_s3 + $0x104] ss:$8 sps:$4 sm:$0xff]  }
 0x159   : > { %2035 = vmatpush1.bf16.msra.mxu0 %v5024_v13 }
 0x15a   : > { %2376 = vmatpush1.bf16.msra.mxu1 %v4769_v18  ;;  %2036 = vmatprep.subr.bf16.mxu0 %v5031_v14  ;;  %v5053_v18 = vld [vmem:[%s5456_s3 + $0x100] ss:$8 sps:$4 sm:$0xff]  }
 0x15b   : > { %2377 = vmatprep.subr.bf16.mxu1 %v4776_v19  ;;  %v1941_v19 = vrot.slane %v1939_v28, 1  ;;  %v4247_v28 = vld [vmem:[%s5458_s5 + $0x40] sm:$0xff]  }
 0x15d   : > { %2037 = vmatpush1.bf16.msra.mxu0 %v5039_v16  ;;  %v1942_v49 = vor.u32 %v1941_v19, %v1937_v46 }
 0x15e   : > { %2378 = vmatpush1.bf16.msra.mxu1 %v4781_v20  ;;  %2038 = vmatprep.subr.bf16.mxu0 %v5046_v17  ;;  %v5067_v20 = vld [vmem:[%s5456_s3 + $0x270] ss:$8 sps:$4 sm:$0xff]  }
 0x15f   : > { %2379 = vmatprep.subr.bf16.mxu1 %v4788_v21  ;;  %v5074_v21 = vld [vmem:[%s5456_s3 + $0x264] ss:$8 sps:$4 sm:$0xff]  }
 0x161   : > { %2039 = vmatpush1.bf16.msra.mxu0 %v5053_v18 }
 0x162   : > { %2380 = vmatpush1.bf16.msra.mxu1 %v4793_v22  ;;  %2325 = vmatprep.subr.bf16.mxu0 %v5060_v34  ;;  %v5081_v22 = vld [vmem:[%s5456_s3 + $0x260] ss:$8 sps:$4 sm:$0xff]  }
 0x163   : > { %2381 = vmatprep.subr.bf16.mxu1 %v4800_v23  ;;  %v5088_v23 = vld [vmem:[%s5456_s3 + $0x254] ss:$8 sps:$4 sm:$0xff]  }
 0x164   : > { %2057 = vmatmul.mubr.bf16.vlgmr.msra.gmra.mxu0 %v1942_v49 }
 0x165   : > { %2326 = vmatpush1.bf16.msra.mxu0 %v5067_v20  ;;  %2357 = vmatprep.mubr.bf16.mxu0 %v5481_v9 }
 0x166   : > { %2382 = vmatpush1.bf16.msra.mxu1 %v4805_v24  ;;  %2327 = vmatprep.subr.bf16.mxu0 %v5074_v21  ;;  %v4211_v24 = vld [vmem:[%s5456_s3 + $0x250] ss:$8 sps:$4 sm:$0xff]  }
 0x167   : > { %2383 = vmatprep.subr.bf16.mxu1 %v4817_v26  ;;  %v4216_v26 = vld [vmem:[%s5456_s3 + $0x244] ss:$8 sps:$4 sm:$0xff]  }
 0x169   : > { %2328 = vmatpush1.bf16.msra.mxu0 %v5081_v22 }
 0x16a   : > { %2384 = vmatpush1.bf16.msra.mxu1 %v4812_v25  ;;  %2329 = vmatprep.subr.bf16.mxu0 %v5088_v23  ;;  %v4214_v25 = vld [vmem:[%s5456_s3 + $0x240] ss:$8 sps:$4 sm:$0xff]  }
 0x16b   : > { %2451 = vmatprep.subr.bf16.mxu1 %v4822_v27  ;;  %v4217_v27 = vld [vmem:[%s5456_s3 + $0x230] ss:$8 sps:$4 sm:$0xff]  }
 0x16d   : > { %2402 = vmatmul.mubr.bf16.vlgmr.msra.gmra.mxu1 %v1942_v49  ;;  %2330 = vmatpush1.bf16.msra.mxu0 %v4211_v24 }
 0x16e   : > { %2452 = vmatpush1.bf16.msra.mxu1 %v4947_v2  ;;  %2331 = vmatprep.subr.bf16.mxu0 %v4216_v26  ;;  %v4222_v2 = vld [vmem:[%s5456_s3 + $0x224] ss:$8 sps:$4 sm:$0xff]  }
 0x16f   : > { %2453 = vmatprep.subr.bf16.mxu1 %v4954_v6  ;;  %2483 = vmatprep.mubr.bf16.mxu1 %v5481_v9  ;;  %v4220_v6 = vld [vmem:[%s5456_s3 + $0x220] ss:$8 sps:$4 sm:$0xff]  }
 0x171   : > { %2332 = vmatpush1.bf16.msra.mxu0 %v4214_v25 }
 0x172   : > { %2454 = vmatpush1.bf16.msra.mxu1 %v4964_v43  ;;  %2333 = vmatprep.subr.bf16.mxu0 %v4219_v10  ;;  %v4225_v43 = vld [vmem:[%s5456_s3 + $0x214] ss:$8 sps:$4 sm:$0xff]  }
 0x173   : > { %2455 = vmatprep.subr.bf16.mxu1 %v4971_v31  ;;  %v4223_v31 = vld [vmem:[%s5456_s3 + $0x210] ss:$8 sps:$4 sm:$0xff]  }
 0x175   : > { %2334 = vmatpush1.bf16.msra.mxu0 %v4217_v27 }
 0x176   : > { %2456 = vmatpush1.bf16.msra.mxu1 %v4977_v54  ;;  %2335 = vmatprep.subr.bf16.mxu0 %v4222_v2  ;;  %v3708_v54 = vcombine.low %v2222_v37, %v5017_v15 }
 0x177   : > { %2457 = vmatprep.subr.bf16.mxu1 %v4985_v47 }
 0x178   : > { %v2243_v47 = vrot.slane %v3708_v54, 1 }
 0x179   : > { %2336 = vmatpush1.bf16.msra.mxu0 %v4220_v6 }
 0x17a   : > { %2458 = vmatpush1.bf16.msra.mxu1 %v4993_v30  ;;  %2337 = vmatprep.subr.bf16.mxu0 %v4225_v43 }
 0x17b   : > { %2459 = vmatprep.subr.bf16.mxu1 %v5000_v33 }
 0x17d   : > { %2338 = vmatpush1.bf16.msra.mxu0 %v4223_v31 }
 0x17e   : > { %2460 = vmatpush1.bf16.msra.mxu1 %v5008_v11  ;;  %2339 = vmatprep.subr.bf16.mxu0 %v4228_v55  ;;  %v4239_v11 = vld [vmem:[%s5458_s5 + $0x60] sm:$0xff]  }
 0x17f   : > { %2461 = vmatprep.subr.bf16.mxu1 %v5015_v12  ;;  %v4240_v12 = vld [vmem:[%s5458_s5 + $0x10] sm:$0xff]  }
 0x181   : > { %2340 = vmatpush1.bf16.msra.mxu0 %v4226_v50 }
 0x182   : > { %2462 = vmatpush1.bf16.msra.mxu1 %v5024_v13  ;;  %2410 = vmatprep.subr.bf16.mxu0 %v4626_v57  ;;  %v5482_v57 = vld [vmem:[#allocation4_spill] sm:$0xff] }
 0x183   : > { %2463 = vmatprep.subr.bf16.mxu1 %v5031_v14  ;;  %v4241_v13 = vld [vmem:[%s5458_s5 + $0x58] sm:$0xff]   ;;  %v4242_v14 = vld [vmem:[%s5458_s5 + $0x8] sm:$0xff]  }
 0x184   : > { %2358 = vmatmul.mubr.bf16.vlgmr.msra.gmra.mxu0 %v2243_v47 }
 0x185   : > { %2411 = vmatpush1.bf16.msra.mxu0 %v4631_v58  ;;  %2442 = vmatprep.mubr.bf16.mxu0 %v5481_v9  ;;  %v5483_v58 = vld [vmem:[#allocation5_spill] sm:$0xff] }
 0x186   : > { %2464 = vmatpush1.bf16.msra.mxu1 %v5039_v16  ;;  %2412 = vmatprep.subr.bf16.mxu0 %v4638_v59  ;;  %v5484_v59 = vld [vmem:[#allocation6_spill] sm:$0xff]  ;;  %v4244_v16 = vld [vmem:[%s5458_s5] sm:$0xff]  }
 0x187   : > { %2465 = vmatprep.subr.bf16.mxu1 %v5046_v17  ;;  %v4245_v17 = vld [vmem:[%s5458_s5 + $0x48] sm:$0xff]  }
 0x189   : > { %2413 = vmatpush1.bf16.msra.mxu0 %v4643_v60  ;;  %v5485_v60 = vld [vmem:[#allocation7_spill] sm:$0xff] }
 0x18a   : > { %2466 = vmatpush1.bf16.msra.mxu1 %v5053_v18  ;;  %2414 = vmatprep.subr.bf16.mxu0 %v4650_v61  ;;  %v5486_v61 = vld [vmem:[#allocation8_spill] sm:$0xff] }
 0x18b   : > { %2543 = vmatprep.subr.bf16.mxu1 %v5060_v34 }
 0x18d   : > { %2484 = vmatmul.mubr.bf16.vlgmr.msra.gmra.mxu1 %v4980_v56  ;;  %2415 = vmatpush1.bf16.msra.mxu0 %v4655_v62  ;;  %v5487_v62 = vld [vmem:[#allocation9_spill] sm:$0xff]  ;;  %v4238_v56 = vld [vmem:[%s5458_s5 + $0x18] sm:$0xff]  }
 0x18e   : > { %2544 = vmatpush1.bf16.msra.mxu1 %v5067_v20  ;;  %2416 = vmatprep.subr.bf16.mxu0 %v4662_v63  ;;  %v5488_v63 = vld [vmem:[#allocation10_spill] sm:$0xff] }
 0x18f   : > { %2545 = vmatprep.subr.bf16.mxu1 %v5074_v21  ;;  %2575 = vmatprep.mubr.bf16.mxu1 %v5481_v9 }
 0x191   : > { %2417 = vmatpush1.bf16.msra.mxu0 %v4667_v0  ;;  %v2537_v0 = vld [vmem:[#allocation2 + $0x8] sm:$0xe] }
 0x192   : > { %2546 = vmatpush1.bf16.msra.mxu1 %v5081_v22  ;;  %2418 = vmatprep.subr.bf16.mxu0 %v4674_v1  ;;  %v3725_v1 = vcombine.low %v2537_v0, %v4949_v8 }
 0x193   : > { %2547 = vmatprep.subr.bf16.mxu1 %v5088_v23 }
 0x195   : > { %2419 = vmatpush1.bf16.msra.mxu0 %v4679_v3  ;;  %v2541_v3 = vrot.slane %v3725_v1, 1 }
 0x196   : > { %2548 = vmatpush1.bf16.msra.mxu1 %v4211_v24  ;;  %2420 = vmatprep.subr.bf16.mxu0 %v5482_v57 }
 0x197   : > { %2549 = vmatprep.subr.bf16.mxu1 %v4216_v26 }
 0x199   : > { %2421 = vmatpush1.bf16.msra.mxu0 %v5483_v58 }
 0x19a   : > { %2550 = vmatpush1.bf16.msra.mxu1 %v4214_v25  ;;  %2422 = vmatprep.subr.bf16.mxu0 %v5484_v59 }
 0x19b   : > { %2551 = vmatprep.subr.bf16.mxu1 %v4219_v10 }
 0x19d   : > { %2423 = vmatpush1.bf16.msra.mxu0 %v5485_v60 }
 0x19e   : > { %2552 = vmatpush1.bf16.msra.mxu1 %v4217_v27  ;;  %2424 = vmatprep.subr.bf16.mxu0 %v5486_v61 }
 0x19f   : > { %2553 = vmatprep.subr.bf16.mxu1 %v4222_v2 }
 0x1a1   : > { %2425 = vmatpush1.bf16.msra.mxu0 %v5487_v62 }
 0x1a2   : > { %2554 = vmatpush1.bf16.msra.mxu1 %v4220_v6  ;;  %2494 = vmatprep.subr.bf16.mxu0 %v5488_v63 }
 0x1a3   : > { %2555 = vmatprep.subr.bf16.mxu1 %v4225_v43 }
 0x1a4   : > { %2443 = vmatmul.mubr.bf16.vlgmr.msra.gmra.mxu0 %v4956_v42  ;;  %v4237_v42 = vld [vmem:[%s5458_s5 + $0x68] sm:$0xff]  }
 0x1a5   : > { %2495 = vmatpush1.bf16.msra.mxu0 %v4848_v29  ;;  %2526 = vmatprep.mubr.bf16.mxu0 %v5481_v9 }
 0x1a6   : > { %2556 = vmatpush1.bf16.msra.mxu1 %v4223_v31  ;;  %2496 = vmatprep.subr.bf16.mxu0 %v4853_v44 }
 0x1a7   : > { %2557 = vmatprep.subr.bf16.mxu1 %v4228_v55 }
 0x1a9   : > { %2497 = vmatpush1.bf16.msra.mxu0 %v4859_v45 }
 0x1aa   : > { %2558 = vmatpush1.bf16.msra.mxu1 %v4226_v50  ;;  %2498 = vmatprep.subr.bf16.mxu0 %v4866_v38  ;;  %v4231_v38 = vld [vmem:[%s5458_s5 + $0x38] sm:$0xff]  }
 0x1ad   : > { %2576 = vmatmul.mubr.bf16.vlgmr.msra.gmra.mxu1 %v2541_v3  ;;  %2499 = vmatpush1.bf16.msra.mxu0 %v4872_v35  ;;  %v4300_v35 = vmov 0.0  }
 0x1ae   : > { %2500 = vmatprep.subr.bf16.mxu0 %v4878_v4  ;;  %3940 = vmatprep.subr.bf16.mxu1 %v4300_v35  ;;  %v4232_v4 = vld [vmem:[%s5458_s5 + $0x30] sm:$0xff]  }
 0x1af   : > { %3941 = vmatpush3.bf16.msra.mxu1 %v4231_v38  ;;  %3956 = vmatprep.mubr.msk.bf16.mxu1 %vm4301_vm1, %v4300_v35 }
 0x1b0   : > { %3942 = vmatprep.subr.bf16.mxu1 %v4300_v35 }
 0x1b1   : > { %2501 = vmatpush1.bf16.msra.mxu0 %v4885_v41  ;;  %v4233_v41 = vld [vmem:[%s5458_s5 + $0x78] sm:$0xff]  }
 0x1b2   : > { %2502 = vmatprep.subr.bf16.mxu0 %v4892_v52  ;;  %v4234_v52 = vld [vmem:[%s5458_s5 + $0x28] sm:$0xff]  }
 0x1b3   : > { %3943 = vmatpush3.bf16.msra.mxu1 %v4232_v4 }
 0x1b4   : > { %3944 = vmatprep.subr.bf16.mxu1 %v4300_v35 }
 0x1b5   : > { %2503 = vmatpush1.bf16.msra.mxu0 %v4899_v32 }
 0x1b6   : > { %2504 = vmatprep.subr.bf16.mxu0 %v4906_v5 }
 0x1b7   : > { %3945 = vmatpush3.bf16.msra.mxu1 %v4234_v52 }
 0x1b8   : > { %3946 = vmatprep.subr.bf16.mxu1 %v4300_v35 }
 0x1b9   : > { %2505 = vmatpush1.bf16.msra.mxu0 %v4912_v48 }
 0x1ba   : > { %2506 = vmatprep.subr.bf16.mxu0 %v4919_v53 }
 0x1bd   : > { %2507 = vmatpush1.bf16.msra.mxu0 %v4926_v7  ;;  %v4235_v7 = vld [vmem:[%s5458_s5 + $0x70] sm:$0xff]  }
 0x1be   : > { %2508 = vmatprep.subr.bf16.mxu0 %v4932_v39  ;;  %v4236_v39 = vld [vmem:[%s5458_s5 + $0x20] sm:$0xff]  }
 0x1bf   : > { %3947 = vmatpush3.bf16.msra.mxu1 %v4236_v39 }
 0x1c0   : > { %3948 = vmatprep.subr.bf16.mxu1 %v4300_v35 }
 0x1c1   : > { %2509 = vmatpush1.bf16.msra.mxu0 %v4938_v36 }
 0x1c2   : > { %3920 = vmatprep.subr.bf16.mxu0 %v4300_v35 }
 0x1c3   : > { %3949 = vmatpush3.bf16.msra.mxu1 %v4238_v56  ;;  %v5264_v56 = vld [vmem:[#allocation3 + $0x4] sm:$0x1] }
 0x1c4   : > { %2527 = vmatmul.mubr.bf16.vlgmr.msra.gmra.mxu0 %v2243_v47  ;;  %3950 = vmatprep.subr.bf16.mxu1 %v4300_v35 }
 0x1c5   : > { %3921 = vmatpush3.bf16.msra.mxu0 %v4233_v41  ;;  %3936 = vmatprep.mubr.msk.bf16.mxu0 %vm4301_vm1, %v4300_v35 }
 0x1c6   : > { %3922 = vmatprep.subr.bf16.mxu0 %v4300_v35 }
 0x1c7   : > { %3951 = vmatpush3.bf16.msra.mxu1 %v4240_v12  ;;  %v4248_v12 = vld [vmem:[%s5458_s5 + $0xf0] sm:$0xff]  }
 0x1c8   : > { %3952 = vmatprep.subr.bf16.mxu1 %v4300_v35 }
 0x1c9   : > { %3923 = vmatpush3.bf16.msra.mxu0 %v4235_v7 }
 0x1ca   : > { %3924 = vmatprep.subr.bf16.mxu0 %v4300_v35 }
 0x1cb   : > { %3953 = vmatpush3.bf16.msra.mxu1 %v4242_v14  ;;  %v4250_v14 = vld [vmem:[%s5458_s5 + $0xb8] sm:$0xff]  }
 0x1cc   : > { %3954 = vmatprep.subr.bf16.mxu1 %v4300_v35 }
 0x1cd   : > { %3925 = vmatpush3.bf16.msra.mxu0 %v4237_v42  ;;  %v4246_v42 = vld [vmem:[%s5458_s5 + $0xf8] sm:$0xff]  }
 0x1ce   : > { %3926 = vmatprep.subr.bf16.mxu0 %v4300_v35 }
 0x1cf   : > { %3955 = vmatpush3.bf16.msra.mxu1 %v4244_v16 }
 0x1d0   : > { %3980 = vmatprep.subr.bf16.mxu1 %v4300_v35 }
 0x1d1   : > { %3927 = vmatpush3.bf16.msra.mxu0 %v4239_v11 }
 0x1d2   : > { %3928 = vmatprep.subr.bf16.mxu0 %v4300_v35 }
 0x1d5   : > { %3929 = vmatpush3.bf16.msra.mxu0 %v4241_v13 }
 0x1d6   : > { %3930 = vmatprep.subr.bf16.mxu0 %v4300_v35 }
 0x1d9   : > { %3931 = vmatpush3.bf16.msra.mxu0 %v4243_v51  ;;  %v4251_v51 = vld [vmem:[%s5458_s5 + $0xe8] sm:$0xff]  }
 0x1da   : > { %3932 = vmatprep.subr.bf16.mxu0 %v4300_v35 }
 0x1dc   : > { %v1905_v29 = vpop.f32.mrf.mxu1 }
 0x1dd   : > { %3933 = vmatpush3.bf16.msra.mxu0 %v4245_v17  ;;  %v4252_v17 = vld [vmem:[%s5458_s5 + $0xb0] sm:$0xff]  }
 0x1de   : > { %v1907_v44 = vpop.f32.mrf.mxu1  ;;  %3934 = vmatprep.subr.bf16.mxu0 %v4300_v35 }
 0x1e0   : > { %v1909_v45 = vpop.f32.mrf.mxu1 }
 0x1e1   : > { %3935 = vmatpush3.bf16.msra.mxu0 %v4247_v28  ;;  %v4253_v28 = vld [vmem:[%s5458_s5 + $0xe0] sm:$0xff]  }
 0x1e2   : > { %v1910_v9 = vpop.f32.mrf.mxu1  ;;  %3960 = vmatprep.subr.bf16.mxu0 %v4300_v35 }
 0x204   : > { %v1784_v32 = vpop.f32.mrf.mxu0 }
 0x205   : > { %v1906_v5 = vadd.f32 %v1905_v29, %v1784_v32 }
 0x206   : > { %v1786_v48 = vpop.f32.mrf.mxu0 }
 0x207   : > { %v1908_v53 = vadd.f32 %v1907_v44, %v1786_v48 }
 0x208   : > { %v1788_v36 = vpop.f32.mrf.mxu0 }
 0x20a   : > { %v1789_v8 = vpop.f32.mrf.mxu0 }
 0x20d   : > { %v2213_v30 = vpop.f32.mrf.mxu1 }
 0x20f   : > { %v2215_v33 = vpop.f32.mrf.mxu1 }
 0x211   : > { %v2217_v40 = vpop.f32.mrf.mxu1 }
 0x213   : > { %v2218_v15 = vpop.f32.mrf.mxu1 }
 0x224   : > { %v2058_v18 = vpop.f32.mrf.mxu0 }
 0x225   : > { %v2065_v19 = vadd.f32 %v2058_v18, %v1906_v5  ;;  %v4254_v18 = vld [vmem:[%s5458_s5 + $0xa8] sm:$0xff]  }
 0x226   : > { %v2060_v34 = vpop.f32.mrf.mxu0 }
 0x227   : > { %v2066_v46 = vadd.f32 %v2060_v34, %v1908_v53  ;;  %v2220_v20 = vadd.f32 %v2213_v30, %v2065_v19  ;;  %v3726_v53 = vld [vmem:[%s5457_s4] ss:$0 sm:$0xff]  ;;  %v4255_v19 = vld [vmem:[%s5458_s5 + $0xd8] sm:$0xff]  }
 0x228   : > { %v2062_v49 = vpop.f32.mrf.mxu0 }
 0x229   : > { %v2221_v21 = vadd.f32 %v2215_v33, %v2066_v46  ;;  %v5298_v46 = vld [vmem:[#allocation3 + $0x4] sm:$0x3] }
 0x22a   : > { %v2063_v22 = vpop.f32.mrf.mxu0  ;;  %v4257_v49 = vld [vmem:[%s5458_s5 + $0xd0] sm:$0xff]  }
 0x22b   : > { %v4258_v22 = vld [vmem:[%s5458_s5 + $0x98] sm:$0xff]  }
 0x22d   : > { %v2403_v23 = vpop.f32.mrf.mxu1 }
 0x22f   : > { %v2405_v24 = vpop.f32.mrf.mxu1 }
 0x231   : > { %v2407_v26 = vpop.f32.mrf.mxu1 }
 0x233   : > { %v2408_v25 = vpop.f32.mrf.mxu1 }
 0x234   : > { %v4260_v25 = vld [vmem:[%s5458_s5 + $0x90] sm:$0xff]  }
 0x244   : > { %v2359_v10 = vpop.f32.mrf.mxu0 }
 0x245   : > { %v2366_v27 = vadd.f32 %v2359_v10, %v2220_v20  ;;  %v4256_v20 = vld [vmem:[%s5458_s5 + $0xa0] sm:$0xff]  }
 0x246   : > { %v2361_v2 = vpop.f32.mrf.mxu0  ;;  %v4261_v10 = vld [vmem:[%s5458_s5 + $0xc0] sm:$0xff]  }
 0x247   : > { %v2367_v6 = vadd.f32 %v2361_v2, %v2221_v21 }
 0x248   : > { %v2363_v43 = vpop.f32.mrf.mxu0 }
 0x249   : > { %v2368_v31 = vmax.f32 %v2366_v27, %v2367_v6  ;;  %v4263_v6 = vld [vmem:[%s5458_s5 + $0x88] sm:$0xff]  }
 0x24a   : > { %v2364_v55 = vpop.f32.mrf.mxu0 }
 0x24d   : > { %v2485_v37 = vpop.f32.mrf.mxu1 }
 0x24f   : > { %v2487_v50 = vpop.f32.mrf.mxu1 }
 0x251   : > { %v2489_v54 = vpop.f32.mrf.mxu1 }
 0x252   : > { %v4267_v54 = vld [vmem:[%s5458_s5 + $0x130] sm:$0xff]  }
 0x253   : > { %v2490_v47 = vpop.f32.mrf.mxu1 }
 0x254   : > { %v4268_v47 = vld [vmem:[%s5458_s5 + $0x128] sm:$0xff]  }
 0x264   : > { %v2444_v57 = vpop.f32.mrf.mxu0 }
 0x265   : > { %v2445_v1 = vadd.f32 %v2444_v57, %v2403_v23  ;;  %v4259_v23 = vld [vmem:[%s5458_s5 + $0xc8] sm:$0xff]   ;;  %v4269_v57 = vld [vmem:[%s5458_s5 + $0x120] sm:$0xff]  }
 0x266   : > { %v2446_v58 = vpop.f32.mrf.mxu0 }
 0x267   : > { %v2447_v3 = vadd.f32 %v2446_v58, %v2405_v24  ;;  %v2492_v29 = vadd.f32 %v2485_v37, %v2445_v1  ;;  %v4266_v37 = vld [vmem:[%s5458_s5 + $0x138] sm:$0xff]  }
 0x268   : > { %v2448_v59 = vpop.f32.mrf.mxu0  ;;  %v4270_v58 = vld [vmem:[%s5458_s5 + $0x118] sm:$0xff]  }
 0x269   : > { %v2493_v9 = vadd.f32 %v2487_v50, %v2447_v3  ;;  %v4271_v59 = vld [vmem:[%s5458_s5 + $0x110] sm:$0xff]   ;;  %v4275_v1 = vld [vmem:[%s5460_s7 + $0x38] sm:$0xff]  }
 0x26a   : > { %v2449_v60 = vpop.f32.mrf.mxu0  ;;  %v4276_v3 = vld [vmem:[%s5460_s7 + $0x30] sm:$0xff]  }
 0x26b   : > { %v4272_v60 = vld [vmem:[%s5458_s5 + $0x108] sm:$0xff]  }
 0x26d   : > { %v2577_v61 = vpop.f32.mrf.mxu1 }
 0x26f   : > { %v2579_v62 = vpop.f32.mrf.mxu1 }
 0x271   : > { %v2581_v63 = vpop.f32.mrf.mxu1 }
 0x273   : > { %v2582_v0 = vpop.f32.mrf.mxu1 }
 0x284   : > { %v2528_v44 = vpop.f32.mrf.mxu0 }
 0x285   : > { %v2535_v45 = vadd.f32 %v2528_v44, %v2492_v29  ;;  %v4277_v29 = vld [vmem:[%s5460_s7 + $0x28] sm:$0xff]   ;;  %v4278_v44 = vld [vmem:[%s5460_s7 + $0x20] sm:$0xff]  }
 0x286   : > { %v2530_v38 = vpop.f32.mrf.mxu0 }
 0x287   : > { %v2536_v4 = vadd.f32 %v2530_v38, %v2493_v9  ;;  %v2584_v52 = vadd.f32 %v2577_v61, %v2535_v45  ;;  %v4279_v45 = vld [vmem:[%s5460_s7 + $0x18] sm:$0xff]   ;;  %v4280_v9 = vld [vmem:[%s5460_s7 + $0x10] sm:$0xff]   ;;  %v4281_v38 = vld [vmem:[%s5460_s7 + $0x8] sm:$0xff]  }
 0x288   : > { %v2532_v41 = vpop.f32.mrf.mxu0 }
 0x289   : > { %v2585_v32 = vadd.f32 %v2579_v62, %v2536_v4  ;;  %v4273_v62 = vld [vmem:[%s5458_s5 + $0x100] sm:$0xff]   ;;  %v4283_v41 = vld [vmem:[%s5462_s9 + $0x38] sm:$0xff]  }
 0x28a   : > { %v2533_v5 = vpop.f32.mrf.mxu0  ;;  %v4282_v4 = vld [vmem:[%s5460_s7] sm:$0xff]  }
 0x28b   : > { %v2586_v48 = vmax.f32 %v2584_v52, %v2585_v32  ;;  %v4284_v52 = vld [vmem:[%s5462_s9 + $0x30] sm:$0xff]   ;;  %v4285_v32 = vld [vmem:[%s5462_s9 + $0x28] sm:$0xff]   ;;  %v4286_v5 = vld [vmem:[%s5462_s9 + $0x20] sm:$0xff]  }
 0x28d   : > { %v2587_v7 = vmax.f32 %v2368_v31, %v2586_v48  ;;  %v4264_v31 = vld [vmem:[%s5458_s5 + $0x80] sm:$0xff]   ;;  %v4287_v48 = vld [vmem:[%s5462_s9 + $0x18] sm:$0xff]  }
 0x28f   : > { %v2595_v39 = vadd.f32 %v3726_v53, %v2587_v7  ;;  %v4288_v53 = vld [vmem:[%s5462_s9 + $0x10] sm:$0xff]  }
 0x291   : > { %v2596_v36 = vmax.f32 %v2595_v39, 0.0 }
 0x293   : > { %v2597_v8 = vpack.c.bf16 %v2596_v36, %v2596_v36 }
 0x295   : > { %2598 = vst [vmem:[#allocation3] sm:$0xf] %v2597_v8 }
 0x29c   : > { %v2600_v30 = vld [vmem:[#allocation3] sm:$0xf] }
 0x29d   : > { %v2617_v33 = vld [vmem:[#allocation3] sm:$0xf]  ;;  %3957 = vmatmul.mubr.bf16.vlgmr.msra.gmra.mxu1 %v2600_v30 }
 0x29e   : > { %v3743_v11 = vcombine.low %v2617_v33, %v5264_v56  ;;  %3981 = vmatpush3.bf16.msra.mxu1 %v4246_v42  ;;  %3996 = vmatprep.mubr.msk.bf16.mxu1 %vm4301_vm1, %v4300_v35  ;;  %v2825_v34 = vld [vmem:[#allocation3] sm:$0xe] }
 0x29f   : > { %3982 = vmatprep.subr.bf16.mxu1 %v4300_v35  ;;  %v3801_v21 = vcombine.low %v2825_v34, %v5298_v46  ;;  %v3776_v55 = vcombine.low %v2825_v34, %v5264_v56  ;;  %v3056_v61 = vld [vmem:[#allocation3] sm:$0xc]  ;;  %v3835_v34 = vld [vmem:[%s5459_s6] ss:$0 sm:$0xff] }
 0x2a0   : > { %v2644_v40 = vshll.u32 %v3743_v11, 16  ;;  %v2642_v15 = vshrl.u32 %v3743_v11, 16  ;;  %v3826_v63 = vcombine.low %v3056_v61, %v5298_v46 }
 0x2a1   : > { %v2959_v24 = vshrl.u32 %v3801_v21, 16  ;;  %v2962_v26 = vshll.u32 %v3801_v21, 16  ;;  %v2846_v50 = vrot.slane %v3776_v55, 1 }
 0x2a2   : > { %v2646_v13 = vrot.slane %v2644_v40, 1  ;;  %3983 = vmatpush3.bf16.msra.mxu1 %v4248_v12  ;;  %v3077_v0 = vrot.slane %v3826_v63, 2 }
 0x2a3   : > { %3984 = vmatprep.subr.bf16.mxu1 %v4300_v35  ;;  %v2961_v27 = vrot.slane %v2959_v24, 1  ;;  %v2964_v2 = vrot.slane %v2962_v26, 2  ;;  %v4289_v26 = vld [vmem:[%s5462_s9 + $0x8] sm:$0xff]  }
 0x2a4   : > { %v2647_v16 = vor.u32 %v2646_v13, %v2642_v15 }
 0x2a5   : > { %v2965_v43 = vor.u32 %v2964_v2, %v2961_v27 }
 0x2a6   : > { %3937 = vmatmul.mubr.bf16.vlgmr.msra.gmra.mxu0 %v2647_v16  ;;  %3985 = vmatpush3.bf16.msra.mxu1 %v4251_v51 }
 0x2a7   : > { %3961 = vmatpush3.bf16.msra.mxu0 %v4250_v14  ;;  %3986 = vmatprep.subr.bf16.mxu1 %v4300_v35 }
 0x2a8   : > { %3962 = vmatprep.subr.bf16.mxu0 %v4300_v35  ;;  %3976 = vmatprep.mubr.msk.bf16.mxu0 %vm4301_vm1, %v4300_v35 }
 0x2aa   : > { %3987 = vmatpush3.bf16.msra.mxu1 %v4253_v28 }
 0x2ab   : > { %3963 = vmatpush3.bf16.msra.mxu0 %v4252_v17  ;;  %3988 = vmatprep.subr.bf16.mxu1 %v4300_v35 }
 0x2ac   : > { %3964 = vmatprep.subr.bf16.mxu0 %v4300_v35 }
 0x2ae   : > { %3989 = vmatpush3.bf16.msra.mxu1 %v4255_v19 }
 0x2af   : > { %3965 = vmatpush3.bf16.msra.mxu0 %v4254_v18  ;;  %3990 = vmatprep.subr.bf16.mxu1 %v4300_v35 }
 0x2b0   : > { %3966 = vmatprep.subr.bf16.mxu0 %v4300_v35 }
 0x2b2   : > { %3991 = vmatpush3.bf16.msra.mxu1 %v4257_v49 }
 0x2b3   : > { %3967 = vmatpush3.bf16.msra.mxu0 %v4256_v20  ;;  %3992 = vmatprep.subr.bf16.mxu1 %v4300_v35 }
 0x2b4   : > { %3968 = vmatprep.subr.bf16.mxu0 %v4300_v35 }
 0x2b6   : > { %3993 = vmatpush3.bf16.msra.mxu1 %v4259_v23 }
 0x2b7   : > { %3969 = vmatpush3.bf16.msra.mxu0 %v4258_v22  ;;  %3994 = vmatprep.subr.bf16.mxu1 %v4300_v35 }
 0x2b8   : > { %3970 = vmatprep.subr.bf16.mxu0 %v4300_v35 }
 0x2ba   : > { %3995 = vmatpush3.bf16.msra.mxu1 %v4261_v10  ;;  %v3836_v10 = vld [vmem:[%s5461_s8] ss:$0 sm:$0xff] }
 0x2bb   : > { %3971 = vmatpush3.bf16.msra.mxu0 %v4260_v25  ;;  %4020 = vmatprep.subr.bf16.mxu1 %v4300_v35  ;;  %v4290_v25 = vld [vmem:[%s5462_s9] sm:$0xff]  }
 0x2bc   : > { %3972 = vmatprep.subr.bf16.mxu0 %v4300_v35 }
 0x2bd   : > { %3997 = vmatmul.mubr.bf16.vlgmr.msra.gmra.mxu1 %v2965_v43 }
 0x2be   : > { %4036 = vmatprep.mubr.msk.bf16.mxu1 %vm4301_vm1, %v4300_v35  ;;  %4021 = vmatpush3.bf16.msra.mxu1 %v4275_v1 }
 0x2bf   : > { %3973 = vmatpush3.bf16.msra.mxu0 %v4263_v6  ;;  %4022 = vmatprep.subr.bf16.mxu1 %v4300_v35 }
 0x2c0   : > { %3974 = vmatprep.subr.bf16.mxu0 %v4300_v35 }
 0x2c2   : > { %4023 = vmatpush3.bf16.msra.mxu1 %v4276_v3 }
 0x2c3   : > { %3975 = vmatpush3.bf16.msra.mxu0 %v4264_v31  ;;  %4024 = vmatprep.subr.bf16.mxu1 %v4300_v35 }
 0x2c4   : > { %4000 = vmatprep.subr.bf16.mxu0 %v4300_v35 }
 0x2c6   : > { %3977 = vmatmul.mubr.bf16.vlgmr.msra.gmra.mxu0 %v2846_v50  ;;  %4025 = vmatpush3.bf16.msra.mxu1 %v4277_v29 }
 0x2c7   : > { %4001 = vmatpush3.bf16.msra.mxu0 %v4266_v37  ;;  %4016 = vmatprep.mubr.msk.bf16.mxu0 %vm4301_vm1, %v4300_v35 }
 0x2c8   : > { %4002 = vmatprep.subr.bf16.mxu0 %v4300_v35  ;;  %4026 = vmatprep.subr.bf16.mxu1 %v4300_v35 }
 0x2ca   : > { %4027 = vmatpush3.bf16.msra.mxu1 %v4278_v44 }
 0x2cb   : > { %4003 = vmatpush3.bf16.msra.mxu0 %v4267_v54  ;;  %4028 = vmatprep.subr.bf16.mxu1 %v4300_v35 }
 0x2cc   : > { %4004 = vmatprep.subr.bf16.mxu0 %v4300_v35 }
 0x2ce   : > { %4029 = vmatpush3.bf16.msra.mxu1 %v4279_v45 }
 0x2cf   : > { %4005 = vmatpush3.bf16.msra.mxu0 %v4268_v47  ;;  %4030 = vmatprep.subr.bf16.mxu1 %v4300_v35 }
 0x2d0   : > { %4006 = vmatprep.subr.bf16.mxu0 %v4300_v35 }
 0x2d2   : > { %4031 = vmatpush3.bf16.msra.mxu1 %v4280_v9 }
 0x2d3   : > { %4007 = vmatpush3.bf16.msra.mxu0 %v4269_v57  ;;  %4032 = vmatprep.subr.bf16.mxu1 %v4300_v35 }
 0x2d4   : > { %4008 = vmatprep.subr.bf16.mxu0 %v4300_v35 }
 0x2d6   : > { %4033 = vmatpush3.bf16.msra.mxu1 %v4281_v38 }
 0x2d7   : > { %4009 = vmatpush3.bf16.msra.mxu0 %v4270_v58  ;;  %4034 = vmatprep.subr.bf16.mxu1 %v4300_v35 }
 0x2d8   : > { %4010 = vmatprep.subr.bf16.mxu0 %v4300_v35 }
 0x2da   : > { %4035 = vmatpush3.bf16.msra.mxu1 %v4282_v4 }
 0x2db   : > { %4011 = vmatpush3.bf16.msra.mxu0 %v4271_v59 }
 0x2dc   : > { %4012 = vmatprep.subr.bf16.mxu0 %v4300_v35 }
 0x2df   : > { %4013 = vmatpush3.bf16.msra.mxu0 %v4272_v60 }
 0x2e0   : > { %4014 = vmatprep.subr.bf16.mxu0 %v4300_v35 }
 0x2e3   : > { %4015 = vmatpush3.bf16.msra.mxu0 %v4273_v62 }
 0x2e4   : > { %4040 = vmatprep.subr.bf16.mxu0 %v4300_v35 }
 0x2e6   : > { %4017 = vmatmul.mubr.bf16.vlgmr.msra.gmra.mxu0 %v3077_v0 }
 0x2e7   : > { %4056 = vmatprep.mubr.msk.bf16.mxu0 %vm4301_vm1, %v4300_v35  ;;  %4041 = vmatpush3.bf16.msra.mxu0 %v4283_v41 }
 0x2e8   : > { %4042 = vmatprep.subr.bf16.mxu0 %v4300_v35 }
 0x2eb   : > { %4043 = vmatpush3.bf16.msra.mxu0 %v4284_v52 }
 0x2ec   : > { %4044 = vmatprep.subr.bf16.mxu0 %v4300_v35 }
 0x2ef   : > { %4045 = vmatpush3.bf16.msra.mxu0 %v4285_v32 }
 0x2f0   : > { %4046 = vmatprep.subr.bf16.mxu0 %v4300_v35 }
 0x2f3   : > { %4047 = vmatpush3.bf16.msra.mxu0 %v4286_v5 }
 0x2f4   : > { %4048 = vmatprep.subr.bf16.mxu0 %v4300_v35 }
 0x2f7   : > { %4049 = vmatpush3.bf16.msra.mxu0 %v4287_v48 }
 0x2f8   : > { %4050 = vmatprep.subr.bf16.mxu0 %v4300_v35 }
 0x2fb   : > { %4051 = vmatpush3.bf16.msra.mxu0 %v4288_v53 }
 0x2fc   : > { %4052 = vmatprep.subr.bf16.mxu0 %v4300_v35 }
 0x2ff   : > { %4053 = vmatpush3.bf16.msra.mxu0 %v4289_v26 }
 0x300   : > { %4054 = vmatprep.subr.bf16.mxu0 %v4300_v35  ;;  %v3845_v35 = vld [vmem:[%s5463_s10] ss:$0 sm:$0xff] }
 0x303   : > { %4055 = vmatpush3.bf16.msra.mxu0 %v4290_v25 }
 0x35d   : > { %v2819_v7 = vpop.f32.mrf.mxu1 }
 0x35f   : > { %v3958_v39 = vpop.f32.mrf.mxu1 }
 0x361   : > { %v2822_v36 = vpop.f32.mrf.mxu1 }
 0x363   : > { %v3959_v8 = vpop.f32.mrf.mxu1 }
 0x366   : > { %v2731_v42 = vpop.f32.mrf.mxu0 }
 0x367   : > { %v2820_v17 = vadd.f32 %v2819_v7, %v2731_v42 }
 0x368   : > { %v3938_v56 = vpop.f32.mrf.mxu0 }
 0x36a   : > { %v2734_v30 = vpop.f32.mrf.mxu0 }
 0x36c   : > { %v3939_v33 = vpop.f32.mrf.mxu0 }
 0x37d   : > { %v3049_v11 = vpop.f32.mrf.mxu1 }
 0x37f   : > { %v3998_v12 = vpop.f32.mrf.mxu1 }
 0x381   : > { %v3052_v40 = vpop.f32.mrf.mxu1 }
 0x383   : > { %v3999_v15 = vpop.f32.mrf.mxu1 }
 0x386   : > { %v2930_v13 = vpop.f32.mrf.mxu0 }
 0x387   : > { %v2936_v28 = vadd.f32 %v2930_v13, %v2820_v17 }
 0x388   : > { %v3978_v14 = vpop.f32.mrf.mxu0 }
 0x389   : > { %v3055_v18 = vadd.f32 %v3049_v11, %v2936_v28 }
 0x38a   : > { %v2933_v51 = vpop.f32.mrf.mxu0 }
 0x38c   : > { %v3979_v16 = vpop.f32.mrf.mxu0 }
 0x3a6   : > { %v3161_v19 = vpop.f32.mrf.mxu0 }
 0x3a7   : > { %v3167_v46 = vadd.f32 %v3161_v19, %v3055_v18 }
 0x3a8   : > { %v4018_v20 = vpop.f32.mrf.mxu0 }
 0x3a9   : > { %v3175_v49 = vadd.f32 %v3835_v34, %v3167_v46 }
 0x3aa   : > { %v3164_v21 = vpop.f32.mrf.mxu0 }
 0x3ab   : > { %v3176_v22 = vmax.f32 %v3175_v49, 0.0 }
 0x3ac   : > { %v4019_v23 = vpop.f32.mrf.mxu0 }
 0x3ad   : > { %v3177_v24 = vpack.c.bf16 %v3176_v22, %v3176_v22 }
 0x3af   : > { %4037 = vmatmul.mubr.bf16.vlgmr.msra.gmra.mxu1 %v3177_v24 }
 0x46f   : > { %v3283_v27 = vpop.f32.mrf.mxu1 }
 0x470   : > { %v3284_v2 = vadd.f32 %v3836_v10, %v3283_v27 }
 0x471   : > { %v4038_v6 = vpop.f32.mrf.mxu1 }
 0x472   : > { %v3289_v43 = vmax.f32 %v3284_v2, 0.0 }
 0x473   : > { %v3286_v31 = vpop.f32.mrf.mxu1 }
 0x474   : > { %v3290_v55 = vpack.c.bf16 %v3289_v43, %v3289_v43 }
 0x475   : > { %v4039_v37 = vpop.f32.mrf.mxu1 }
 0x476   : > { %4057 = vmatmul.mubr.bf16.vlgmr.msra.gmra.mxu0 %v3290_v55 }
 0x536   : > { %v3396_v50 = vpop.f32.mrf.mxu0 }
 0x537   : > { %v3397_v54 = vadd.f32 %v3845_v35, %v3396_v50 }
 0x538   : > { %v4058_v47 = vpop.f32.mrf.mxu0 }
 0x539   : > { %3403 = vst.msk [vmem:[%s384_s26] sm:$0xff] %vm3402_vm2, %v3397_v54 }
 0x53a   : > { %v3399_v57 = vpop.f32.mrf.mxu0 }
 0x53c   : > { %v4059_v58 = vpop.f32.mrf.mxu0 }
 0x53d PF: > { %s21_s17 = sadd.s32 1, %s4297_s17  }
 0x53e   : > { %p18_p4 = scmp.ge.s32.totalorder %s21_s17, 4  }
 0x540   :  { %20 = sbr.rel (!%p18_p4) target bundleno = 1 (0x1), region = 110 }

</bundles_post_ra>
